<compile_context>
chip_gen: v7x
topology: tpu7x:2x2x1
jax: 0.10.0
libtpu: 0.0.40
codegen_flags: <defaults>
</compile_context>

<pallas_src>
import functools
import math

import jax
import jax.numpy as jnp
from jax import lax
from jax.experimental import pallas as pl
from jax.experimental.pallas import tpu as pltpu


# --------------------------------------------------------------------------
# config (small shapes consistent with the module)
# --------------------------------------------------------------------------
D_MODEL = 32
N_HEADS = 2
HEAD_DIM = D_MODEL // N_HEADS
D_FFN = 64
N_LAYERS = 2
D_ID = 8
D_EMB = 12
N_ID = 16
N_OUT = 10
SEQ = 8
BATCH = 2
D_IN = 2 * D_EMB + D_ID                             # 32
HEAD_HID = int(round(math.sqrt(D_MODEL * N_OUT)))   # rounded_square_root -> 18
LANE = 128                                          # lane-dense padding width
EPS = 1e-6


# --------------------------------------------------------------------------
# packed-weight layout: every block padded to 128 lanes, rows 8-aligned,
# all stacked along the sublane axis into ONE [TOTAL_ROWS, 128] buffer.
# --------------------------------------------------------------------------
def _build_layout():
    layout = {}
    row = 0

    def add(name, rows):
        nonlocal row
        layout[name] = row
        row += (rows + 7) // 8 * 8          # keep every block 8-row aligned

    add("cw1", D_IN)                        # [32,  32] -> cols 0:32
    add("cb1", 1)
    add("cw2", LANE)                        # [32,  32] in rows 0:32 / cols 0:32
    add("cb2", 1)
    for l in range(N_LAYERS):
        add(f"ln1_{l}", 1)
        add(f"wqkv_{l}", LANE)              # [32,  96] -> Q|K|V in cols 0:96
        add(f"bqkv_{l}", 1)
        add(f"wo_{l}", D_MODEL)             # [32,  32] (row-sliced per head)
        add(f"bo_{l}", 1)
        add(f"ln2_{l}", 1)
        add(f"w1_{l}", LANE)                # [32,  64]
        add(f"w3_{l}", LANE)                # [32,  64]
        add(f"w2_{l}", LANE)                # [64,  32]
    add("fn", 1)
    add("hw1", LANE)                        # [32,  18]
    add("hb1", 1)
    add("hw2", LANE)                        # [18,  10]
    add("hb2", 1)
    return layout, row


_LAYOUT, _TOTAL_ROWS = _build_layout()      # 1608 rows x 128 lanes x 4 B ~= 0.82 MB


# --------------------------------------------------------------------------
# kernel helpers
# --------------------------------------------------------------------------
def _rmsnorm_padded(v, w_row, d):
    # v: [M, 128] with lanes d:128 == 0  ->  mean over d == sum/d (padding is exact)
    ss = jnp.sum(v * v, axis=-1, keepdims=True) * (1.0 / d)
    return v * lax.rsqrt(ss + EPS) * w_row


# --------------------------------------------------------------------------
# single fused kernel: correct_dim MLP + N transformer blocks + norm + head
# --------------------------------------------------------------------------
def fused_forward_kernel(x_ref, w_ref, o_ref, *, n_layers, n_heads, batch, seq):
    f32 = jnp.float32
    D = D_MODEL
    hd = D // n_heads
    scale = 1.0 / math.sqrt(hd)

    def mat(name, rows=LANE):
        r0 = _LAYOUT[name]
        return w_ref[r0:r0 + rows, :]

    def vec(name):
        r0 = _LAYOUT[name]
        return w_ref[r0:r0 + 1, :]

    # ---- correct_dim MLP: Linear -> ReLU -> Linear --------------------------
    x_in = x_ref[...]                                            # [16, 32]
    h = jnp.dot(x_in, mat("cw1", D_IN), preferred_element_type=f32) + vec("cb1")
    h = jnp.maximum(h, 0.0)                                      # [16, 128]
    x = jnp.dot(h, mat("cw2"), preferred_element_type=f32) + vec("cb2")
    # x: [16, 128], lanes D:128 are exactly zero (zero-padded weights/biases)

    # ---- transformer blocks (fully unrolled static loops) --------------------
    for l in range(n_layers):
        # attention sub-block (pre-norm, fused QKV projection padded to 128 lanes)
        hn = _rmsnorm_padded(x, vec(f"ln1_{l}"), D)
        qkv = jnp.dot(hn, mat(f"wqkv_{l}"), preferred_element_type=f32) \
            + vec(f"bqkv_{l}")                                   # [16,128] Q|K|V|0

        # scores for all (batch, head) blocks, packed along sublanes -> 1 softmax
        s_blocks = []
        for b in range(batch):
            r0 = b * seq
            for hh in range(n_heads):
                c = hh * hd
                qh = qkv[r0:r0 + seq, c:c + hd]
                kh = qkv[r0:r0 + seq, D + c:D + c + hd]
                # A @ B^T via dot_general -- no materialized transpose
                s_blocks.append(
                    lax.dot_general(qh, kh, (((1,), (1,)), ((), ())),
                                    preferred_element_type=f32))
        s_all = jnp.concatenate(s_blocks, axis=0) * scale        # [B*H*S, S] = [32, 8]
        m = jnp.max(s_all, axis=-1, keepdims=True)
        e = jnp.exp(s_all - m)
        p = e * pl.reciprocal(jnp.sum(e, axis=-1, keepdims=True), approx=True)

        # per-head attention output, combine folded into the output projection
        # (no lane-axis concatenation; only cheap 8-row-aligned sublane concat)
        wo = mat(f"wo_{l}", D_MODEL)                             # [32, 128]
        batch_rows = []
        for b in range(batch):
            r0 = b * seq
            acc = None
            for hh in range(n_heads):
                c = hh * hd
                i0 = (b * n_heads + hh) * seq
                pb = p[i0:i0 + seq, :]                           # [8, 8]
                vh = qkv[r0:r0 + seq, 2 * D + c:2 * D + c + hd]  # [8, 16]
                ob = jnp.dot(pb, vh, preferred_element_type=f32)           # [8, 16]
                pr = jnp.dot(ob, wo[c:c + hd, :], preferred_element_type=f32)  # [8,128]
                acc = pr if acc is None else acc + pr
            batch_rows.append(acc)
        x = x + jnp.concatenate(batch_rows, axis=0) + vec(f"bo_{l}")

        # FFN sub-block (SwiGLU, W1/W3 as separate padded matmuls -> no lane split)
        hn2 = _rmsnorm_padded(x, vec(f"ln2_{l}"), D)
        g = jnp.dot(hn2, mat(f"w1_{l}"), preferred_element_type=f32)   # [16,128]
        u = jnp.dot(hn2, mat(f"w3_{l}"), preferred_element_type=f32)   # [16,128]
        hf = jax.nn.silu(g) * u                                        # padding stays 0
        x = x + jnp.dot(hf, mat(f"w2_{l}"), preferred_element_type=f32)

    # ---- final RMSNorm + classification head (zero-padded to 128 lanes) ------
    # Head is applied to all B*S rows (cheap) so the single output store is a
    # fully lane-dense [16, 128] vst; the wrapper picks token 0 and the real classes.
    xn = _rmsnorm_padded(x, vec("fn"), D)
    h1 = jnp.dot(xn, mat("hw1"), preferred_element_type=f32) + vec("hb1")
    h1 = jnp.maximum(h1, 0.0)
    logits = jnp.dot(h1, mat("hw2"), preferred_element_type=f32) + vec("hb2")
    o_ref[...] = logits.astype(o_ref.dtype)


def fused_forward_pallas(x2d, w_packed):
    M = x2d.shape[0]
    assert M == BATCH * SEQ
    kernel = functools.partial(
        fused_forward_kernel,
        n_layers=N_LAYERS, n_heads=N_HEADS, batch=BATCH, seq=SEQ)
    nbytes = 4 * (x2d.size + w_packed.size + M * LANE)
    return pl.pallas_call(
        kernel,
        out_shape=jax.ShapeDtypeStruct((M, LANE), jnp.float32),
        in_specs=[pl.BlockSpec(memory_space=pltpu.MemorySpace.VMEM),
                  pl.BlockSpec(memory_space=pltpu.MemorySpace.VMEM)],
        out_specs=pl.BlockSpec(memory_space=pltpu.MemorySpace.VMEM),
        compiler_params=pltpu.CompilerParams(vmem_limit_bytes=16 * 1024 * 1024),
        cost_estimate=pl.CostEstimate(flops=7_000_000, transcendentals=5_000,
                                      bytes_accessed=nbytes),
    )(x2d, w_packed)


# --------------------------------------------------------------------------
# parameters (deterministic synthetic init, PyTorch-like logical layout)
# --------------------------------------------------------------------------
def init_params(key):
    def nrm(k, shape, scale=0.02):
        return (scale * jax.random.normal(k, shape)).astype(jnp.float32)

    keys = iter(jax.random.split(key, 64))
    p = {
        "embed": nrm(next(keys), (N_ID, D_ID), 1.0),
        "cw1": nrm(next(keys), (D_IN, D_MODEL)),
        "cb1": nrm(next(keys), (D_MODEL,)),
        "cw2": nrm(next(keys), (D_MODEL, D_MODEL)),
        "cb2": nrm(next(keys), (D_MODEL,)),
        "fn": jnp.ones((D_MODEL,), jnp.float32),
        "hw1": nrm(next(keys), (D_MODEL, HEAD_HID)),
        "hb1": nrm(next(keys), (HEAD_HID,)),
        "hw2": nrm(next(keys), (HEAD_HID, N_OUT)),
        "hb2": nrm(next(keys), (N_OUT,)),
        "layers": [],
    }
    for _ in range(N_LAYERS):
        p["layers"].append({
            "ln1": jnp.ones((D_MODEL,), jnp.float32),
            "wqkv": nrm(next(keys), (D_MODEL, 3 * D_MODEL)),
            "bqkv": nrm(next(keys), (3 * D_MODEL,)),
            "wo": nrm(next(keys), (D_MODEL, D_MODEL)),
            "bo": nrm(next(keys), (D_MODEL,)),
            "ln2": jnp.ones((D_MODEL,), jnp.float32),
            "w1": nrm(next(keys), (D_MODEL, D_FFN)),
            "w3": nrm(next(keys), (D_MODEL, D_FFN)),
            "w2": nrm(next(keys), (D_FFN, D_MODEL)),
        })
    return p


def pack_params(p):
    """Pack all non-embedding weights into one [TOTAL_ROWS, 128] VMEM-friendly blob."""
    w = jnp.zeros((_TOTAL_ROWS, LANE), jnp.float32)

    def put(buf, name, arr):
        arr = jnp.asarray(arr, jnp.float32)
        if arr.ndim == 1:
            arr = arr[None, :]
        r0 = _LAYOUT[name]
        return buf.at[r0:r0 + arr.shape[0], :arr.shape[1]].set(arr)

    w = put(w, "cw1", p["cw1"]);  w = put(w, "cb1", p["cb1"])
    w = put(w, "cw2", p["cw2"]);  w = put(w, "cb2", p["cb2"])
    for l, lp in enumerate(p["layers"]):
        w = put(w, f"ln1_{l}", lp["ln1"])
        w = put(w, f"wqkv_{l}", lp["wqkv"])
        w = put(w, f"bqkv_{l}", lp["bqkv"])
        w = put(w, f"wo_{l}", lp["wo"])
        w = put(w, f"bo_{l}", lp["bo"])
        w = put(w, f"ln2_{l}", lp["ln2"])
        w = put(w, f"w1_{l}", lp["w1"])
        w = put(w, f"w3_{l}", lp["w3"])
        w = put(w, f"w2_{l}", lp["w2"])
    w = put(w, "fn", p["fn"])
    w = put(w, "hw1", p["hw1"]);  w = put(w, "hb1", p["hb1"])
    w = put(w, "hw2", p["hw2"]);  w = put(w, "hb2", p["hb2"])
    return w


# --------------------------------------------------------------------------
# full forward (mirrors theModel.forward)
# --------------------------------------------------------------------------
def forward(params, w_packed, contig1, contig2, emb1, emb2):
    del contig2  # present in the PyTorch signature but unused by its forward
    ids = params["embed"][contig1]                    # embedding gather (host-side glue)
    x = jnp.concatenate([ids, emb1, emb2], axis=-1)   # [B, S, d_id + 2*d_emb]
    B, S, d_in = x.shape
    out = fused_forward_pallas(x.reshape(B * S, d_in), w_packed)   # [B*S, 128]
    logits = out[::S, :N_OUT]                         # token 0 of each batch, real classes
    return {"logits": logits}


# --------------------------------------------------------------------------
# pure-JAX reference (for a sanity check against the kernel)
# --------------------------------------------------------------------------
def forward_ref(params, contig1, contig2, emb1, emb2):
    del contig2
    ids = params["embed"][contig1]
    x = jnp.concatenate([ids, emb1, emb2], axis=-1)   # [B, S, 32]
    B, S, _ = x.shape

    def rms(v, w):
        return v * lax.rsqrt(jnp.mean(v * v, -1, keepdims=True) + EPS) * w

    h = jnp.maximum(x @ params["cw1"] + params["cb1"], 0.0)
    x = h @ params["cw2"] + params["cb2"]
    for lp in params["layers"]:
        hn = rms(x, lp["ln1"])
        qkv = hn @ lp["wqkv"] + lp["bqkv"]
        q, k, v = jnp.split(qkv, 3, axis=-1)
        q = q.reshape(B, S, N_HEADS, HEAD_DIM).transpose(0, 2, 1, 3)
        k = k.reshape(B, S, N_HEADS, HEAD_DIM).transpose(0, 2, 1, 3)
        v = v.reshape(B, S, N_HEADS, HEAD_DIM).transpose(0, 2, 1, 3)
        s = jnp.einsum("bhqd,bhkd->bhqk", q, k) / math.sqrt(HEAD_DIM)
        pr = jax.nn.softmax(s, axis=-1)
        a = jnp.einsum("bhqk,bhkd->bhqd", pr, v).transpose(0, 2, 1, 3).reshape(B, S, D_MODEL)
        x = x + (a @ lp["wo"] + lp["bo"])
        hn2 = rms(x, lp["ln2"])
        x = x + (jax.nn.silu(hn2 @ lp["w1"]) * (hn2 @ lp["w3"])) @ lp["w2"]
    xn = rms(x[:, 0, :], params["fn"])
    hh = jnp.maximum(xn @ params["hw1"] + params["hb1"], 0.0)
    return {"logits": hh @ params["hw2"] + params["hb2"]}


# --------------------------------------------------------------------------
if __name__ == "__main__":
    key = jax.random.PRNGKey(0)
    kp, k1, k2, k3, k4 = jax.random.split(key, 5)

    params = init_params(kp)
    w_packed = pack_params(params)

    contig1 = jax.random.randint(k1, (BATCH, SEQ), 0, N_ID)
    contig2 = jax.random.randint(k2, (BATCH, SEQ), 0, N_ID)
    emb1 = jax.random.normal(k3, (BATCH, SEQ, D_EMB), dtype=jnp.float32)
    emb2 = jax.random.normal(k4, (BATCH, SEQ, D_EMB), dtype=jnp.float32)

    fwd = jax.jit(forward)
    out = fwd(params, w_packed, contig1, contig2, emb1, emb2)
    logits = jax.block_until_ready(out["logits"])
    assert logits.shape == (BATCH, N_OUT), logits.shape
    assert bool(jnp.all(jnp.isfinite(logits)))

    # sanity check against a pure-JAX reference (loose tolerance: MXU + approx-rcp path)
    with jax.default_matmul_precision("highest"):
        ref = forward_ref(params, contig1, contig2, emb1, emb2)["logits"]
    ref = jax.block_until_ready(ref)
    maxdiff = float(jnp.max(jnp.abs(logits - ref)))
    assert bool(jnp.allclose(logits, ref, rtol=5e-2, atol=1e-3)), (
        "max abs diff vs reference: %e" % maxdiff)

    print("KERNEL_OK")
</pallas_src>

<mosaic_0001>
module attributes {stable_mosaic.version = 11 : i64} {
  func.func @fused_forward_kernel(%arg0: memref<16x32xf32, #tpu.memory_space<vmem>>, %arg1: memref<1608x128xf32, #tpu.memory_space<vmem>>, %arg2: memref<16x128xf32, #tpu.memory_space<vmem>>) attributes {dimension_semantics = [], scalar_prefetch = 0 : i64, scratch_operands = 0 : i64, tpu.core_type = #tpu.core_type<tc>} {
    %c0 = arith.constant 0 : index
    %c0_0 = arith.constant 0 : index
    %0 = vector.load %arg0[%c0, %c0_0] : memref<16x32xf32, #tpu.memory_space<vmem>>, vector<16x32xf32>
    %c0_1 = arith.constant 0 : index
    %c0_2 = arith.constant 0 : index
    %1 = vector.load %arg1[%c0_1, %c0_2] : memref<1608x128xf32, #tpu.memory_space<vmem>>, vector<32x128xf32>
    %cst = arith.constant dense<0.000000e+00> : vector<16x128xf32>
    %2 = tpu.matmul %0, %1, %cst {dimension_numbers = #tpu.dot_dimension_numbers<[1], [0], [0], [1], [0, 0, 1, 1], [], []>} : vector<16x32xf32>, vector<32x128xf32>, vector<16x128xf32> -> vector<16x128xf32>
    %c32 = arith.constant 32 : index
    %c0_3 = arith.constant 0 : index
    %3 = vector.load %arg1[%c32, %c0_3] : memref<1608x128xf32, #tpu.memory_space<vmem>>, vector<1x128xf32>
    %4 = vector.broadcast %3 : vector<1x128xf32> to vector<16x128xf32>
    %5 = arith.addf %2, %4 : vector<16x128xf32>
    %cst_4 = arith.constant 0.000000e+00 : f32
    %6 = vector.broadcast %cst_4 : f32 to vector<16x128xf32>
    %7 = arith.maximumf %5, %6 : vector<16x128xf32>
    %c40 = arith.constant 40 : index
    %c0_5 = arith.constant 0 : index
    %8 = vector.load %arg1[%c40, %c0_5] : memref<1608x128xf32, #tpu.memory_space<vmem>>, vector<128x128xf32>
    %cst_6 = arith.constant dense<0.000000e+00> : vector<16x128xf32>
    %9 = tpu.matmul %7, %8, %cst_6 {dimension_numbers = #tpu.dot_dimension_numbers<[1], [0], [0], [1], [0, 0, 1, 1], [], []>} : vector<16x128xf32>, vector<128x128xf32>, vector<16x128xf32> -> vector<16x128xf32>
    %c168 = arith.constant 168 : index
    %c0_7 = arith.constant 0 : index
    %10 = vector.load %arg1[%c168, %c0_7] : memref<1608x128xf32, #tpu.memory_space<vmem>>, vector<1x128xf32>
    %11 = vector.broadcast %10 : vector<1x128xf32> to vector<16x128xf32>
    %12 = arith.addf %9, %11 : vector<16x128xf32>
    %c176 = arith.constant 176 : index
    %c0_8 = arith.constant 0 : index
    %13 = vector.load %arg1[%c176, %c0_8] : memref<1608x128xf32, #tpu.memory_space<vmem>>, vector<1x128xf32>
    %14 = arith.mulf %12, %12 : vector<16x128xf32>
    %cst_9 = arith.constant dense<0.000000e+00> : vector<16xf32>
    %15 = vector.multi_reduction <add>, %14, %cst_9 [1] : vector<16x128xf32> to vector<16xf32>
    %16 = vector.shape_cast %15 : vector<16xf32> to vector<16x1xf32>
    %cst_10 = arith.constant 3.125000e-02 : f32
    %17 = vector.broadcast %cst_10 : f32 to vector<16x1xf32>
    %18 = arith.mulf %16, %17 : vector<16x1xf32>
    %cst_11 = arith.constant 9.99999997E-7 : f32
    %19 = vector.broadcast %cst_11 : f32 to vector<16x1xf32>
    %20 = arith.addf %18, %19 : vector<16x1xf32>
    %21 = math.rsqrt %20 : vector<16x1xf32>
    %22 = vector.broadcast %21 : vector<16x1xf32> to vector<16x128xf32>
    %23 = arith.mulf %12, %22 : vector<16x128xf32>
    %24 = vector.broadcast %13 : vector<1x128xf32> to vector<16x128xf32>
    %25 = arith.mulf %23, %24 : vector<16x128xf32>
    %c184 = arith.constant 184 : index
    %c0_12 = arith.constant 0 : index
    %26 = vector.load %arg1[%c184, %c0_12] : memref<1608x128xf32, #tpu.memory_space<vmem>>, vector<128x128xf32>
    %cst_13 = arith.constant dense<0.000000e+00> : vector<16x128xf32>
    %27 = tpu.matmul %25, %26, %cst_13 {dimension_numbers = #tpu.dot_dimension_numbers<[1], [0], [0], [1], [0, 0, 1, 1], [], []>} : vector<16x128xf32>, vector<128x128xf32>, vector<16x128xf32> -> vector<16x128xf32>
    %c312 = arith.constant 312 : index
    %c0_14 = arith.constant 0 : index
    %28 = vector.load %arg1[%c312, %c0_14] : memref<1608x128xf32, #tpu.memory_space<vmem>>, vector<1x128xf32>
    %29 = vector.broadcast %28 : vector<1x128xf32> to vector<16x128xf32>
    %30 = arith.addf %27, %29 : vector<16x128xf32>
    %31 = vector.extract_strided_slice %30 {offsets = [0, 0], sizes = [8, 16], strides = [1, 1]} : vector<16x128xf32> to vector<8x16xf32>
    %32 = vector.extract_strided_slice %30 {offsets = [0, 32], sizes = [8, 16], strides = [1, 1]} : vector<16x128xf32> to vector<8x16xf32>
    %cst_15 = arith.constant dense<0.000000e+00> : vector<8x8xf32>
    %33 = tpu.matmul %31, %32, %cst_15 {dimension_numbers = #tpu.dot_dimension_numbers<[1], [1], [0], [0], [0, 0, 1, 0], [], []>} : vector<8x16xf32>, vector<8x16xf32>, vector<8x8xf32> -> vector<8x8xf32>
    %34 = vector.extract_strided_slice %30 {offsets = [0, 16], sizes = [8, 16], strides = [1, 1]} : vector<16x128xf32> to vector<8x16xf32>
    %35 = vector.extract_strided_slice %30 {offsets = [0, 48], sizes = [8, 16], strides = [1, 1]} : vector<16x128xf32> to vector<8x16xf32>
    %cst_16 = arith.constant dense<0.000000e+00> : vector<8x8xf32>
    %36 = tpu.matmul %34, %35, %cst_16 {dimension_numbers = #tpu.dot_dimension_numbers<[1], [1], [0], [0], [0, 0, 1, 0], [], []>} : vector<8x16xf32>, vector<8x16xf32>, vector<8x8xf32> -> vector<8x8xf32>
    %37 = vector.extract_strided_slice %30 {offsets = [8, 0], sizes = [8, 16], strides = [1, 1]} : vector<16x128xf32> to vector<8x16xf32>
    %38 = vector.extract_strided_slice %30 {offsets = [8, 32], sizes = [8, 16], strides = [1, 1]} : vector<16x128xf32> to vector<8x16xf32>
    %cst_17 = arith.constant dense<0.000000e+00> : vector<8x8xf32>
    %39 = tpu.matmul %37, %38, %cst_17 {dimension_numbers = #tpu.dot_dimension_numbers<[1], [1], [0], [0], [0, 0, 1, 0], [], []>} : vector<8x16xf32>, vector<8x16xf32>, vector<8x8xf32> -> vector<8x8xf32>
    %40 = vector.extract_strided_slice %30 {offsets = [8, 16], sizes = [8, 16], strides = [1, 1]} : vector<16x128xf32> to vector<8x16xf32>
    %41 = vector.extract_strided_slice %30 {offsets = [8, 48], sizes = [8, 16], strides = [1, 1]} : vector<16x128xf32> to vector<8x16xf32>
    %cst_18 = arith.constant dense<0.000000e+00> : vector<8x8xf32>
    %42 = tpu.matmul %40, %41, %cst_18 {dimension_numbers = #tpu.dot_dimension_numbers<[1], [1], [0], [0], [0, 0, 1, 0], [], []>} : vector<8x16xf32>, vector<8x16xf32>, vector<8x8xf32> -> vector<8x8xf32>
    %43 = tpu.concatenate %33, %36, %39, %42 in 0 : vector<8x8xf32>, vector<8x8xf32>, vector<8x8xf32>, vector<8x8xf32> -> vector<32x8xf32>
    %cst_19 = arith.constant 2.500000e-01 : f32
    %44 = vector.broadcast %cst_19 : f32 to vector<32x8xf32>
    %45 = arith.mulf %43, %44 : vector<32x8xf32>
    %cst_20 = arith.constant dense<0xFF800000> : vector<32xf32>
    %46 = vector.multi_reduction <maximumf>, %45, %cst_20 [1] : vector<32x8xf32> to vector<32xf32>
    %47 = vector.shape_cast %46 : vector<32xf32> to vector<32x1xf32>
    %48 = vector.broadcast %47 : vector<32x1xf32> to vector<32x8xf32>
    %49 = arith.subf %45, %48 : vector<32x8xf32>
    %50 = math.exp %49 : vector<32x8xf32>
    %cst_21 = arith.constant dense<0.000000e+00> : vector<32xf32>
    %51 = vector.multi_reduction <add>, %50, %cst_21 [1] : vector<32x8xf32> to vector<32xf32>
    %52 = vector.shape_cast %51 : vector<32xf32> to vector<32x1xf32>
    %53 = tpu.reciprocal %52 {approx = true} : vector<32x1xf32> -> vector<32x1xf32>
    %54 = vector.broadcast %53 : vector<32x1xf32> to vector<32x8xf32>
    %55 = arith.mulf %50, %54 : vector<32x8xf32>
    %c320 = arith.constant 320 : index
    %c0_22 = arith.constant 0 : index
    %56 = vector.load %arg1[%c320, %c0_22] : memref<1608x128xf32, #tpu.memory_space<vmem>>, vector<32x128xf32>
    %57 = vector.extract_strided_slice %55 {offsets = [0, 0], sizes = [8, 8], strides = [1, 1]} : vector<32x8xf32> to vector<8x8xf32>
    %58 = vector.extract_strided_slice %30 {offsets = [0, 64], sizes = [8, 16], strides = [1, 1]} : vector<16x128xf32> to vector<8x16xf32>
    %cst_23 = arith.constant dense<0.000000e+00> : vector<8x16xf32>
    %59 = tpu.matmul %57, %58, %cst_23 {dimension_numbers = #tpu.dot_dimension_numbers<[1], [0], [0], [1], [0, 0, 1, 1], [], []>} : vector<8x8xf32>, vector<8x16xf32>, vector<8x16xf32> -> vector<8x16xf32>
    %60 = vector.extract_strided_slice %56 {offsets = [0, 0], sizes = [16, 128], strides = [1, 1]} : vector<32x128xf32> to vector<16x128xf32>
    %cst_24 = arith.constant dense<0.000000e+00> : vector<8x128xf32>
    %61 = tpu.matmul %59, %60, %cst_24 {dimension_numbers = #tpu.dot_dimension_numbers<[1], [0], [0], [1], [0, 0, 1, 1], [], []>} : vector<8x16xf32>, vector<16x128xf32>, vector<8x128xf32> -> vector<8x128xf32>
    %62 = vector.extract_strided_slice %55 {offsets = [8, 0], sizes = [8, 8], strides = [1, 1]} : vector<32x8xf32> to vector<8x8xf32>
    %63 = vector.extract_strided_slice %30 {offsets = [0, 80], sizes = [8, 16], strides = [1, 1]} : vector<16x128xf32> to vector<8x16xf32>
    %cst_25 = arith.constant dense<0.000000e+00> : vector<8x16xf32>
    %64 = tpu.matmul %62, %63, %cst_25 {dimension_numbers = #tpu.dot_dimension_numbers<[1], [0], [0], [1], [0, 0, 1, 1], [], []>} : vector<8x8xf32>, vector<8x16xf32>, vector<8x16xf32> -> vector<8x16xf32>
    %65 = vector.extract_strided_slice %56 {offsets = [16, 0], sizes = [16, 128], strides = [1, 1]} : vector<32x128xf32> to vector<16x128xf32>
    %cst_26 = arith.constant dense<0.000000e+00> : vector<8x128xf32>
    %66 = tpu.matmul %64, %65, %cst_26 {dimension_numbers = #tpu.dot_dimension_numbers<[1], [0], [0], [1], [0, 0, 1, 1], [], []>} : vector<8x16xf32>, vector<16x128xf32>, vector<8x128xf32> -> vector<8x128xf32>
    %67 = arith.addf %61, %66 : vector<8x128xf32>
    %68 = vector.extract_strided_slice %55 {offsets = [16, 0], sizes = [8, 8], strides = [1, 1]} : vector<32x8xf32> to vector<8x8xf32>
    %69 = vector.extract_strided_slice %30 {offsets = [8, 64], sizes = [8, 16], strides = [1, 1]} : vector<16x128xf32> to vector<8x16xf32>
    %cst_27 = arith.constant dense<0.000000e+00> : vector<8x16xf32>
    %70 = tpu.matmul %68, %69, %cst_27 {dimension_numbers = #tpu.dot_dimension_numbers<[1], [0], [0], [1], [0, 0, 1, 1], [], []>} : vector<8x8xf32>, vector<8x16xf32>, vector<8x16xf32> -> vector<8x16xf32>
    %71 = vector.extract_strided_slice %56 {offsets = [0, 0], sizes = [16, 128], strides = [1, 1]} : vector<32x128xf32> to vector<16x128xf32>
    %cst_28 = arith.constant dense<0.000000e+00> : vector<8x128xf32>
    %72 = tpu.matmul %70, %71, %cst_28 {dimension_numbers = #tpu.dot_dimension_numbers<[1], [0], [0], [1], [0, 0, 1, 1], [], []>} : vector<8x16xf32>, vector<16x128xf32>, vector<8x128xf32> -> vector<8x128xf32>
    %73 = vector.extract_strided_slice %55 {offsets = [24, 0], sizes = [8, 8], strides = [1, 1]} : vector<32x8xf32> to vector<8x8xf32>
    %74 = vector.extract_strided_slice %30 {offsets = [8, 80], sizes = [8, 16], strides = [1, 1]} : vector<16x128xf32> to vector<8x16xf32>
    %cst_29 = arith.constant dense<0.000000e+00> : vector<8x16xf32>
    %75 = tpu.matmul %73, %74, %cst_29 {dimension_numbers = #tpu.dot_dimension_numbers<[1], [0], [0], [1], [0, 0, 1, 1], [], []>} : vector<8x8xf32>, vector<8x16xf32>, vector<8x16xf32> -> vector<8x16xf32>
    %76 = vector.extract_strided_slice %56 {offsets = [16, 0], sizes = [16, 128], strides = [1, 1]} : vector<32x128xf32> to vector<16x128xf32>
    %cst_30 = arith.constant dense<0.000000e+00> : vector<8x128xf32>
    %77 = tpu.matmul %75, %76, %cst_30 {dimension_numbers = #tpu.dot_dimension_numbers<[1], [0], [0], [1], [0, 0, 1, 1], [], []>} : vector<8x16xf32>, vector<16x128xf32>, vector<8x128xf32> -> vector<8x128xf32>
    %78 = arith.addf %72, %77 : vector<8x128xf32>
    %79 = tpu.concatenate %67, %78 in 0 : vector<8x128xf32>, vector<8x128xf32> -> vector<16x128xf32>
    %80 = arith.addf %12, %79 : vector<16x128xf32>
    %c352 = arith.constant 352 : index
    %c0_31 = arith.constant 0 : index
    %81 = vector.load %arg1[%c352, %c0_31] : memref<1608x128xf32, #tpu.memory_space<vmem>>, vector<1x128xf32>
    %82 = vector.broadcast %81 : vector<1x128xf32> to vector<16x128xf32>
    %83 = arith.addf %80, %82 : vector<16x128xf32>
    %c360 = arith.constant 360 : index
    %c0_32 = arith.constant 0 : index
    %84 = vector.load %arg1[%c360, %c0_32] : memref<1608x128xf32, #tpu.memory_space<vmem>>, vector<1x128xf32>
    %85 = arith.mulf %83, %83 : vector<16x128xf32>
    %cst_33 = arith.constant dense<0.000000e+00> : vector<16xf32>
    %86 = vector.multi_reduction <add>, %85, %cst_33 [1] : vector<16x128xf32> to vector<16xf32>
    %87 = vector.shape_cast %86 : vector<16xf32> to vector<16x1xf32>
    %cst_34 = arith.constant 3.125000e-02 : f32
    %88 = vector.broadcast %cst_34 : f32 to vector<16x1xf32>
    %89 = arith.mulf %87, %88 : vector<16x1xf32>
    %cst_35 = arith.constant 9.99999997E-7 : f32
    %90 = vector.broadcast %cst_35 : f32 to vector<16x1xf32>
    %91 = arith.addf %89, %90 : vector<16x1xf32>
    %92 = math.rsqrt %91 : vector<16x1xf32>
    %93 = vector.broadcast %92 : vector<16x1xf32> to vector<16x128xf32>
    %94 = arith.mulf %83, %93 : vector<16x128xf32>
    %95 = vector.broadcast %84 : vector<1x128xf32> to vector<16x128xf32>
    %96 = arith.mulf %94, %95 : vector<16x128xf32>
    %c368 = arith.constant 368 : index
    %c0_36 = arith.constant 0 : index
    %97 = vector.load %arg1[%c368, %c0_36] : memref<1608x128xf32, #tpu.memory_space<vmem>>, vector<128x128xf32>
    %cst_37 = arith.constant dense<0.000000e+00> : vector<16x128xf32>
    %98 = tpu.matmul %96, %97, %cst_37 {dimension_numbers = #tpu.dot_dimension_numbers<[1], [0], [0], [1], [0, 0, 1, 1], [], []>} : vector<16x128xf32>, vector<128x128xf32>, vector<16x128xf32> -> vector<16x128xf32>
    %c496 = arith.constant 496 : index
    %c0_38 = arith.constant 0 : index
    %99 = vector.load %arg1[%c496, %c0_38] : memref<1608x128xf32, #tpu.memory_space<vmem>>, vector<128x128xf32>
    %cst_39 = arith.constant dense<0.000000e+00> : vector<16x128xf32>
    %100 = tpu.matmul %96, %99, %cst_39 {dimension_numbers = #tpu.dot_dimension_numbers<[1], [0], [0], [1], [0, 0, 1, 1], [], []>} : vector<16x128xf32>, vector<128x128xf32>, vector<16x128xf32> -> vector<16x128xf32>
    %101 = arith.negf %98 : vector<16x128xf32>
    %102 = math.exp %101 : vector<16x128xf32>
    %cst_40 = arith.constant 1.000000e+00 : f32
    %103 = vector.broadcast %cst_40 : f32 to vector<16x128xf32>
    %104 = arith.addf %103, %102 : vector<16x128xf32>
    %105 = arith.divf %103, %104 : vector<16x128xf32>
    %106 = arith.mulf %98, %105 : vector<16x128xf32>
    %107 = arith.mulf %106, %100 : vector<16x128xf32>
    %c624 = arith.constant 624 : index
    %c0_41 = arith.constant 0 : index
    %108 = vector.load %arg1[%c624, %c0_41] : memref<1608x128xf32, #tpu.memory_space<vmem>>, vector<128x128xf32>
    %cst_42 = arith.constant dense<0.000000e+00> : vector<16x128xf32>
    %109 = tpu.matmul %107, %108, %cst_42 {dimension_numbers = #tpu.dot_dimension_numbers<[1], [0], [0], [1], [0, 0, 1, 1], [], []>} : vector<16x128xf32>, vector<128x128xf32>, vector<16x128xf32> -> vector<16x128xf32>
    %110 = arith.addf %83, %109 : vector<16x128xf32>
    %c752 = arith.constant 752 : index
    %c0_43 = arith.constant 0 : index
    %111 = vector.load %arg1[%c752, %c0_43] : memref<1608x128xf32, #tpu.memory_space<vmem>>, vector<1x128xf32>
    %112 = arith.mulf %110, %110 : vector<16x128xf32>
    %cst_44 = arith.constant dense<0.000000e+00> : vector<16xf32>
    %113 = vector.multi_reduction <add>, %112, %cst_44 [1] : vector<16x128xf32> to vector<16xf32>
    %114 = vector.shape_cast %113 : vector<16xf32> to vector<16x1xf32>
    %cst_45 = arith.constant 3.125000e-02 : f32
    %115 = vector.broadcast %cst_45 : f32 to vector<16x1xf32>
    %116 = arith.mulf %114, %115 : vector<16x1xf32>
    %cst_46 = arith.constant 9.99999997E-7 : f32
    %117 = vector.broadcast %cst_46 : f32 to vector<16x1xf32>
    %118 = arith.addf %116, %117 : vector<16x1xf32>
    %119 = math.rsqrt %118 : vector<16x1xf32>
    %120 = vector.broadcast %119 : vector<16x1xf32> to vector<16x128xf32>
    %121 = arith.mulf %110, %120 : vector<16x128xf32>
    %122 = vector.broadcast %111 : vector<1x128xf32> to vector<16x128xf32>
    %123 = arith.mulf %121, %122 : vector<16x128xf32>
    %c760 = arith.constant 760 : index
    %c0_47 = arith.constant 0 : index
    %124 = vector.load %arg1[%c760, %c0_47] : memref<1608x128xf32, #tpu.memory_space<vmem>>, vector<128x128xf32>
    %cst_48 = arith.constant dense<0.000000e+00> : vector<16x128xf32>
    %125 = tpu.matmul %123, %124, %cst_48 {dimension_numbers = #tpu.dot_dimension_numbers<[1], [0], [0], [1], [0, 0, 1, 1], [], []>} : vector<16x128xf32>, vector<128x128xf32>, vector<16x128xf32> -> vector<16x128xf32>
    %c888 = arith.constant 888 : index
    %c0_49 = arith.constant 0 : index
    %126 = vector.load %arg1[%c888, %c0_49] : memref<1608x128xf32, #tpu.memory_space<vmem>>, vector<1x128xf32>
    %127 = vector.broadcast %126 : vector<1x128xf32> to vector<16x128xf32>
    %128 = arith.addf %125, %127 : vector<16x128xf32>
    %129 = vector.extract_strided_slice %128 {offsets = [0, 0], sizes = [8, 16], strides = [1, 1]} : vector<16x128xf32> to vector<8x16xf32>
    %130 = vector.extract_strided_slice %128 {offsets = [0, 32], sizes = [8, 16], strides = [1, 1]} : vector<16x128xf32> to vector<8x16xf32>
    %cst_50 = arith.constant dense<0.000000e+00> : vector<8x8xf32>
    %131 = tpu.matmul %129, %130, %cst_50 {dimension_numbers = #tpu.dot_dimension_numbers<[1], [1], [0], [0], [0, 0, 1, 0], [], []>} : vector<8x16xf32>, vector<8x16xf32>, vector<8x8xf32> -> vector<8x8xf32>
    %132 = vector.extract_strided_slice %128 {offsets = [0, 16], sizes = [8, 16], strides = [1, 1]} : vector<16x128xf32> to vector<8x16xf32>
    %133 = vector.extract_strided_slice %128 {offsets = [0, 48], sizes = [8, 16], strides = [1, 1]} : vector<16x128xf32> to vector<8x16xf32>
    %cst_51 = arith.constant dense<0.000000e+00> : vector<8x8xf32>
    %134 = tpu.matmul %132, %133, %cst_51 {dimension_numbers = #tpu.dot_dimension_numbers<[1], [1], [0], [0], [0, 0, 1, 0], [], []>} : vector<8x16xf32>, vector<8x16xf32>, vector<8x8xf32> -> vector<8x8xf32>
    %135 = vector.extract_strided_slice %128 {offsets = [8, 0], sizes = [8, 16], strides = [1, 1]} : vector<16x128xf32> to vector<8x16xf32>
    %136 = vector.extract_strided_slice %128 {offsets = [8, 32], sizes = [8, 16], strides = [1, 1]} : vector<16x128xf32> to vector<8x16xf32>
    %cst_52 = arith.constant dense<0.000000e+00> : vector<8x8xf32>
    %137 = tpu.matmul %135, %136, %cst_52 {dimension_numbers = #tpu.dot_dimension_numbers<[1], [1], [0], [0], [0, 0, 1, 0], [], []>} : vector<8x16xf32>, vector<8x16xf32>, vector<8x8xf32> -> vector<8x8xf32>
    %138 = vector.extract_strided_slice %128 {offsets = [8, 16], sizes = [8, 16], strides = [1, 1]} : vector<16x128xf32> to vector<8x16xf32>
    %139 = vector.extract_strided_slice %128 {offsets = [8, 48], sizes = [8, 16], strides = [1, 1]} : vector<16x128xf32> to vector<8x16xf32>
    %cst_53 = arith.constant dense<0.000000e+00> : vector<8x8xf32>
    %140 = tpu.matmul %138, %139, %cst_53 {dimension_numbers = #tpu.dot_dimension_numbers<[1], [1], [0], [0], [0, 0, 1, 0], [], []>} : vector<8x16xf32>, vector<8x16xf32>, vector<8x8xf32> -> vector<8x8xf32>
    %141 = tpu.concatenate %131, %134, %137, %140 in 0 : vector<8x8xf32>, vector<8x8xf32>, vector<8x8xf32>, vector<8x8xf32> -> vector<32x8xf32>
    %cst_54 = arith.constant 2.500000e-01 : f32
    %142 = vector.broadcast %cst_54 : f32 to vector<32x8xf32>
    %143 = arith.mulf %141, %142 : vector<32x8xf32>
    %cst_55 = arith.constant dense<0xFF800000> : vector<32xf32>
    %144 = vector.multi_reduction <maximumf>, %143, %cst_55 [1] : vector<32x8xf32> to vector<32xf32>
    %145 = vector.shape_cast %144 : vector<32xf32> to vector<32x1xf32>
    %146 = vector.broadcast %145 : vector<32x1xf32> to vector<32x8xf32>
    %147 = arith.subf %143, %146 : vector<32x8xf32>
    %148 = math.exp %147 : vector<32x8xf32>
    %cst_56 = arith.constant dense<0.000000e+00> : vector<32xf32>
    %149 = vector.multi_reduction <add>, %148, %cst_56 [1] : vector<32x8xf32> to vector<32xf32>
    %150 = vector.shape_cast %149 : vector<32xf32> to vector<32x1xf32>
    %151 = tpu.reciprocal %150 {approx = true} : vector<32x1xf32> -> vector<32x1xf32>
    %152 = vector.broadcast %151 : vector<32x1xf32> to vector<32x8xf32>
    %153 = arith.mulf %148, %152 : vector<32x8xf32>
    %c896 = arith.constant 896 : index
    %c0_57 = arith.constant 0 : index
    %154 = vector.load %arg1[%c896, %c0_57] : memref<1608x128xf32, #tpu.memory_space<vmem>>, vector<32x128xf32>
    %155 = vector.extract_strided_slice %153 {offsets = [0, 0], sizes = [8, 8], strides = [1, 1]} : vector<32x8xf32> to vector<8x8xf32>
    %156 = vector.extract_strided_slice %128 {offsets = [0, 64], sizes = [8, 16], strides = [1, 1]} : vector<16x128xf32> to vector<8x16xf32>
    %cst_58 = arith.constant dense<0.000000e+00> : vector<8x16xf32>
    %157 = tpu.matmul %155, %156, %cst_58 {dimension_numbers = #tpu.dot_dimension_numbers<[1], [0], [0], [1], [0, 0, 1, 1], [], []>} : vector<8x8xf32>, vector<8x16xf32>, vector<8x16xf32> -> vector<8x16xf32>
    %158 = vector.extract_strided_slice %154 {offsets = [0, 0], sizes = [16, 128], strides = [1, 1]} : vector<32x128xf32> to vector<16x128xf32>
    %cst_59 = arith.constant dense<0.000000e+00> : vector<8x128xf32>
    %159 = tpu.matmul %157, %158, %cst_59 {dimension_numbers = #tpu.dot_dimension_numbers<[1], [0], [0], [1], [0, 0, 1, 1], [], []>} : vector<8x16xf32>, vector<16x128xf32>, vector<8x128xf32> -> vector<8x128xf32>
    %160 = vector.extract_strided_slice %153 {offsets = [8, 0], sizes = [8, 8], strides = [1, 1]} : vector<32x8xf32> to vector<8x8xf32>
    %161 = vector.extract_strided_slice %128 {offsets = [0, 80], sizes = [8, 16], strides = [1, 1]} : vector<16x128xf32> to vector<8x16xf32>
    %cst_60 = arith.constant dense<0.000000e+00> : vector<8x16xf32>
    %162 = tpu.matmul %160, %161, %cst_60 {dimension_numbers = #tpu.dot_dimension_numbers<[1], [0], [0], [1], [0, 0, 1, 1], [], []>} : vector<8x8xf32>, vector<8x16xf32>, vector<8x16xf32> -> vector<8x16xf32>
    %163 = vector.extract_strided_slice %154 {offsets = [16, 0], sizes = [16, 128], strides = [1, 1]} : vector<32x128xf32> to vector<16x128xf32>
    %cst_61 = arith.constant dense<0.000000e+00> : vector<8x128xf32>
    %164 = tpu.matmul %162, %163, %cst_61 {dimension_numbers = #tpu.dot_dimension_numbers<[1], [0], [0], [1], [0, 0, 1, 1], [], []>} : vector<8x16xf32>, vector<16x128xf32>, vector<8x128xf32> -> vector<8x128xf32>
    %165 = arith.addf %159, %164 : vector<8x128xf32>
    %166 = vector.extract_strided_slice %153 {offsets = [16, 0], sizes = [8, 8], strides = [1, 1]} : vector<32x8xf32> to vector<8x8xf32>
    %167 = vector.extract_strided_slice %128 {offsets = [8, 64], sizes = [8, 16], strides = [1, 1]} : vector<16x128xf32> to vector<8x16xf32>
    %cst_62 = arith.constant dense<0.000000e+00> : vector<8x16xf32>
    %168 = tpu.matmul %166, %167, %cst_62 {dimension_numbers = #tpu.dot_dimension_numbers<[1], [0], [0], [1], [0, 0, 1, 1], [], []>} : vector<8x8xf32>, vector<8x16xf32>, vector<8x16xf32> -> vector<8x16xf32>
    %169 = vector.extract_strided_slice %154 {offsets = [0, 0], sizes = [16, 128], strides = [1, 1]} : vector<32x128xf32> to vector<16x128xf32>
    %cst_63 = arith.constant dense<0.000000e+00> : vector<8x128xf32>
    %170 = tpu.matmul %168, %169, %cst_63 {dimension_numbers = #tpu.dot_dimension_numbers<[1], [0], [0], [1], [0, 0, 1, 1], [], []>} : vector<8x16xf32>, vector<16x128xf32>, vector<8x128xf32> -> vector<8x128xf32>
    %171 = vector.extract_strided_slice %153 {offsets = [24, 0], sizes = [8, 8], strides = [1, 1]} : vector<32x8xf32> to vector<8x8xf32>
    %172 = vector.extract_strided_slice %128 {offsets = [8, 80], sizes = [8, 16], strides = [1, 1]} : vector<16x128xf32> to vector<8x16xf32>
    %cst_64 = arith.constant dense<0.000000e+00> : vector<8x16xf32>
    %173 = tpu.matmul %171, %172, %cst_64 {dimension_numbers = #tpu.dot_dimension_numbers<[1], [0], [0], [1], [0, 0, 1, 1], [], []>} : vector<8x8xf32>, vector<8x16xf32>, vector<8x16xf32> -> vector<8x16xf32>
    %174 = vector.extract_strided_slice %154 {offsets = [16, 0], sizes = [16, 128], strides = [1, 1]} : vector<32x128xf32> to vector<16x128xf32>
    %cst_65 = arith.constant dense<0.000000e+00> : vector<8x128xf32>
    %175 = tpu.matmul %173, %174, %cst_65 {dimension_numbers = #tpu.dot_dimension_numbers<[1], [0], [0], [1], [0, 0, 1, 1], [], []>} : vector<8x16xf32>, vector<16x128xf32>, vector<8x128xf32> -> vector<8x128xf32>
    %176 = arith.addf %170, %175 : vector<8x128xf32>
    %177 = tpu.concatenate %165, %176 in 0 : vector<8x128xf32>, vector<8x128xf32> -> vector<16x128xf32>
    %178 = arith.addf %110, %177 : vector<16x128xf32>
    %c928 = arith.constant 928 : index
    %c0_66 = arith.constant 0 : index
    %179 = vector.load %arg1[%c928, %c0_66] : memref<1608x128xf32, #tpu.memory_space<vmem>>, vector<1x128xf32>
    %180 = vector.broadcast %179 : vector<1x128xf32> to vector<16x128xf32>
    %181 = arith.addf %178, %180 : vector<16x128xf32>
    %c936 = arith.constant 936 : index
    %c0_67 = arith.constant 0 : index
    %182 = vector.load %arg1[%c936, %c0_67] : memref<1608x128xf32, #tpu.memory_space<vmem>>, vector<1x128xf32>
    %183 = arith.mulf %181, %181 : vector<16x128xf32>
    %cst_68 = arith.constant dense<0.000000e+00> : vector<16xf32>
    %184 = vector.multi_reduction <add>, %183, %cst_68 [1] : vector<16x128xf32> to vector<16xf32>
    %185 = vector.shape_cast %184 : vector<16xf32> to vector<16x1xf32>
    %cst_69 = arith.constant 3.125000e-02 : f32
    %186 = vector.broadcast %cst_69 : f32 to vector<16x1xf32>
    %187 = arith.mulf %185, %186 : vector<16x1xf32>
    %cst_70 = arith.constant 9.99999997E-7 : f32
    %188 = vector.broadcast %cst_70 : f32 to vector<16x1xf32>
    %189 = arith.addf %187, %188 : vector<16x1xf32>
    %190 = math.rsqrt %189 : vector<16x1xf32>
    %191 = vector.broadcast %190 : vector<16x1xf32> to vector<16x128xf32>
    %192 = arith.mulf %181, %191 : vector<16x128xf32>
    %193 = vector.broadcast %182 : vector<1x128xf32> to vector<16x128xf32>
    %194 = arith.mulf %192, %193 : vector<16x128xf32>
    %c944 = arith.constant 944 : index
    %c0_71 = arith.constant 0 : index
    %195 = vector.load %arg1[%c944, %c0_71] : memref<1608x128xf32, #tpu.memory_space<vmem>>, vector<128x128xf32>
    %cst_72 = arith.constant dense<0.000000e+00> : vector<16x128xf32>
    %196 = tpu.matmul %194, %195, %cst_72 {dimension_numbers = #tpu.dot_dimension_numbers<[1], [0], [0], [1], [0, 0, 1, 1], [], []>} : vector<16x128xf32>, vector<128x128xf32>, vector<16x128xf32> -> vector<16x128xf32>
    %c1072 = arith.constant 1072 : index
    %c0_73 = arith.constant 0 : index
    %197 = vector.load %arg1[%c1072, %c0_73] : memref<1608x128xf32, #tpu.memory_space<vmem>>, vector<128x128xf32>
    %cst_74 = arith.constant dense<0.000000e+00> : vector<16x128xf32>
    %198 = tpu.matmul %194, %197, %cst_74 {dimension_numbers = #tpu.dot_dimension_numbers<[1], [0], [0], [1], [0, 0, 1, 1], [], []>} : vector<16x128xf32>, vector<128x128xf32>, vector<16x128xf32> -> vector<16x128xf32>
    %199 = arith.negf %196 : vector<16x128xf32>
    %200 = math.exp %199 : vector<16x128xf32>
    %cst_75 = arith.constant 1.000000e+00 : f32
    %201 = vector.broadcast %cst_75 : f32 to vector<16x128xf32>
    %202 = arith.addf %201, %200 : vector<16x128xf32>
    %203 = arith.divf %201, %202 : vector<16x128xf32>
    %204 = arith.mulf %196, %203 : vector<16x128xf32>
    %205 = arith.mulf %204, %198 : vector<16x128xf32>
    %c1200 = arith.constant 1200 : index
    %c0_76 = arith.constant 0 : index
    %206 = vector.load %arg1[%c1200, %c0_76] : memref<1608x128xf32, #tpu.memory_space<vmem>>, vector<128x128xf32>
    %cst_77 = arith.constant dense<0.000000e+00> : vector<16x128xf32>
    %207 = tpu.matmul %205, %206, %cst_77 {dimension_numbers = #tpu.dot_dimension_numbers<[1], [0], [0], [1], [0, 0, 1, 1], [], []>} : vector<16x128xf32>, vector<128x128xf32>, vector<16x128xf32> -> vector<16x128xf32>
    %208 = arith.addf %181, %207 : vector<16x128xf32>
    %c1328 = arith.constant 1328 : index
    %c0_78 = arith.constant 0 : index
    %209 = vector.load %arg1[%c1328, %c0_78] : memref<1608x128xf32, #tpu.memory_space<vmem>>, vector<1x128xf32>
    %210 = arith.mulf %208, %208 : vector<16x128xf32>
    %cst_79 = arith.constant dense<0.000000e+00> : vector<16xf32>
    %211 = vector.multi_reduction <add>, %210, %cst_79 [1] : vector<16x128xf32> to vector<16xf32>
    %212 = vector.shape_cast %211 : vector<16xf32> to vector<16x1xf32>
    %cst_80 = arith.constant 3.125000e-02 : f32
    %213 = vector.broadcast %cst_80 : f32 to vector<16x1xf32>
    %214 = arith.mulf %212, %213 : vector<16x1xf32>
    %cst_81 = arith.constant 9.99999997E-7 : f32
    %215 = vector.broadcast %cst_81 : f32 to vector<16x1xf32>
    %216 = arith.addf %214, %215 : vector<16x1xf32>
    %217 = math.rsqrt %216 : vector<16x1xf32>
    %218 = vector.broadcast %217 : vector<16x1xf32> to vector<16x128xf32>
    %219 = arith.mulf %208, %218 : vector<16x128xf32>
    %220 = vector.broadcast %209 : vector<1x128xf32> to vector<16x128xf32>
    %221 = arith.mulf %219, %220 : vector<16x128xf32>
    %c1336 = arith.constant 1336 : index
    %c0_82 = arith.constant 0 : index
    %222 = vector.load %arg1[%c1336, %c0_82] : memref<1608x128xf32, #tpu.memory_space<vmem>>, vector<128x128xf32>
    %cst_83 = arith.constant dense<0.000000e+00> : vector<16x128xf32>
    %223 = tpu.matmul %221, %222, %cst_83 {dimension_numbers = #tpu.dot_dimension_numbers<[1], [0], [0], [1], [0, 0, 1, 1], [], []>} : vector<16x128xf32>, vector<128x128xf32>, vector<16x128xf32> -> vector<16x128xf32>
    %c1464 = arith.constant 1464 : index
    %c0_84 = arith.constant 0 : index
    %224 = vector.load %arg1[%c1464, %c0_84] : memref<1608x128xf32, #tpu.memory_space<vmem>>, vector<1x128xf32>
    %225 = vector.broadcast %224 : vector<1x128xf32> to vector<16x128xf32>
    %226 = arith.addf %223, %225 : vector<16x128xf32>
    %cst_85 = arith.constant 0.000000e+00 : f32
    %227 = vector.broadcast %cst_85 : f32 to vector<16x128xf32>
    %228 = arith.maximumf %226, %227 : vector<16x128xf32>
    %c1472 = arith.constant 1472 : index
    %c0_86 = arith.constant 0 : index
    %229 = vector.load %arg1[%c1472, %c0_86] : memref<1608x128xf32, #tpu.memory_space<vmem>>, vector<128x128xf32>
    %cst_87 = arith.constant dense<0.000000e+00> : vector<16x128xf32>
    %230 = tpu.matmul %228, %229, %cst_87 {dimension_numbers = #tpu.dot_dimension_numbers<[1], [0], [0], [1], [0, 0, 1, 1], [], []>} : vector<16x128xf32>, vector<128x128xf32>, vector<16x128xf32> -> vector<16x128xf32>
    %c1600 = arith.constant 1600 : index
    %c0_88 = arith.constant 0 : index
    %231 = vector.load %arg1[%c1600, %c0_88] : memref<1608x128xf32, #tpu.memory_space<vmem>>, vector<1x128xf32>
    %232 = vector.broadcast %231 : vector<1x128xf32> to vector<16x128xf32>
    %233 = arith.addf %230, %232 : vector<16x128xf32>
    %c0_89 = arith.constant 0 : index
    %c0_90 = arith.constant 0 : index
    %234 = vector.load %arg2[%c0_89, %c0_90] : memref<16x128xf32, #tpu.memory_space<vmem>>, vector<16x128xf32>
    tpu.vector_store %arg2[%c0_89, %c0_90], %233 {strides = array<i32>} : memref<16x128xf32, #tpu.memory_space<vmem>>, vector<16x128xf32>,
    return
  }
}

</mosaic_0001>

<bundles_post_ra>
// kernel: forward.1
= control target key start
LH: loop header
LB: loop body
LE: loop exit
PB: predicated region body
PF: predicated region fallthrough
CT: control target
= control target key end

     0   :  { %7 = vsyncpa [#allocation3], 0  ;;  %s4562_s9 = smov [#allocation2]   ;;  %s4844_s0 = inlined_call_operand.vmem [shape: f32[16,32], index: 0, kind: input, shape index: {}]   ;;  %s4845_s1 = inlined_call_operand.hbm [shape: f32[1608,128], index: 1, kind: input, shape index: {}]   ;;  %s4846_s2 = inlined_call_operand.vmem [shape: f32[16,128], index: 2, kind: output, shape index: {}]  }
   0x1   :  { %s15_s10 = sshll.u32 %s4562_s9, 4  ;;  %s4538_s13 = scalar_lea.hbm %s4845_s1, 25728  ;;  %s16_s10 = int_to_ptr.vmem [resolvable:$true] %s15_s10 }
   0x2   :  { %p4539_p0 = scmp.ne.s32.totalorder %s4845_s1, %s4538_s13  ;;  %p4542_p1 = scmp.lt.u32.totalorder %s4538_s13, %s4845_s1 }
   0x4   :  { %p4544_p2 = pnand %p4542_p1, %p4539_p0 }
   0x6   :  { %4547 = shalt.err (!%p4544_p2)
}
   0x7   :  { %s4548_s18 = scalar_lea.vmem %s16_s10, 25728  ;;  %p4553_p4 = scmp.lt.s32.totalorder %s16_s10, %s16_s10 }
   0x8   :  { %p4549_p3 = scmp.ne.s32.totalorder %s16_s10, %s4548_s18  ;;  %p4554_p5 = scmp.lt.s32.totalorder %s4548_s18, %s4548_s18 }
   0xa   :  { %p4555_p6 = por %p4554_p5, %p4553_p4 }
   0xc   :  { %p4556_p7 = pnand %p4555_p6, %p4549_p3 }
   0xe   :  { %4559 = shalt.err (!%p4556_p7)
}
   0xf   :  { %s4563_s19 = smov 128   ;;  %s4564_s20 = smov 8  }
  0x10   :  { %21 = dma.hbm_to_vmem [thread:$0]  %s4845_s1, 25728, %s16_s10, [#allocation3], %s4563_s19, %s4563_s19, %s4564_s20  }
  0x11   :  { %4560 = dma.done.wait [#allocation3], 25728  }
  0x12   :  { %4561 = vsyncadd [#allocation3], 4294941568  ;;  %vm36_vm0 = vcmask 261120   ;;  %v27_v0 = vld [vmem:[#allocation2] sm:$0xff]  ;;  %v28_v1 = vld [vmem:[#allocation2 + $0x8] sm:$0xff]  ;;  %vm4566_vm1 = vmmov 0  }
  0x13   :  { %v29_v2 = vld [vmem:[#allocation2 + $0x10] sm:$0xff]  ;;  %v4075_v3 = vpack.c.bf16 %v28_v1, %v27_v0  ;;  %v30_v4 = vld [vmem:[#allocation2 + $0x18] sm:$0xff]  ;;  %v25_v5 = vld [vmem:[%s4844_s0] sm:$0xff]  ;;  %s4568_s26 = smov 96   ;;  %s4569_s27 = smov 80   ;;  %vm336_vm2 = vcmask 130048  }
  0x14   :  { %v4079_v6 = vpack.c.bf16 %v30_v4, %v29_v2  ;;  %3551 = vmatprep.mubr.msk.f32.mxu1 %vm36_vm0, %v25_v5  ;;  %v120_v7 = vld [vmem:[#allocation2 + $0x28] sm:$0xff]  ;;  %v121_v8 = vld [vmem:[#allocation2 + $0x30] sm:$0xff]  ;;  %v122_v10 = vld [vmem:[#allocation2 + $0x38] sm:$0xff]  ;;  %vm648_vm3 = vcmask 64512   ;;  %s4570_s28 = smov 64   ;;  %s4571_s29 = smov 48  }
  0x15   :  { %4076 = vmatprep.subr.bf16.mxu1 %v4075_v3  ;;  %v4083_v9 = vpack.c.bf16 %v121_v8, %v120_v7  ;;  %v123_v11 = vld [vmem:[#allocation2 + $0x40] sm:$0xff]  ;;  %v26_v12 = vld [vmem:[%s4844_s0 + $0x8] sm:$0xff]  ;;  %v125_v15 = vld [vmem:[#allocation2 + $0x50] sm:$0xff]  ;;  %s4567_s0 = smov 112  }
  0x16   :  { %4078 = vmatpush3.bf16.msra.mxu1 %v4075_v3  ;;  %v4087_v13 = vpack.c.bf16 %v123_v11, %v122_v10  ;;  %v124_v14 = vld [vmem:[#allocation2 + $0x48] sm:$0xff]  ;;  %v126_v17 = vld [vmem:[#allocation2 + $0x58] sm:$0xff]  ;;  %v127_v18 = vld [vmem:[#allocation2 + $0x60] sm:$0xff] }
  0x17   :  { %4080 = vmatprep.subr.bf16.mxu1 %v4079_v6  ;;  %v4091_v16 = vpack.c.bf16 %v125_v15, %v124_v14  ;;  %v4095_v19 = vpack.c.bf16 %v127_v18, %v126_v17  ;;  %v128_v20 = vld [vmem:[#allocation2 + $0x68] sm:$0xff]  ;;  %v129_v21 = vld [vmem:[#allocation2 + $0x70] sm:$0xff]  ;;  %v130_v23 = vld [vmem:[#allocation2 + $0x78] sm:$0xff] }
  0x18   :  { %v4099_v22 = vpack.c.bf16 %v129_v21, %v128_v20  ;;  %v131_v24 = vld [vmem:[#allocation2 + $0x80] sm:$0xff]  ;;  %v132_v26 = vld [vmem:[#allocation2 + $0x88] sm:$0xff]  ;;  %v133_v27 = vld [vmem:[#allocation2 + $0x90] sm:$0xff] }
  0x19   :  { %v4103_v25 = vpack.c.bf16 %v131_v24, %v130_v23  ;;  %v4107_v28 = vpack.c.bf16 %v133_v27, %v132_v26  ;;  %v134_v29 = vld [vmem:[#allocation2 + $0x98] sm:$0xff]  ;;  %v135_v30 = vld [vmem:[#allocation2 + $0xa0] sm:$0xff]  ;;  %v239_v41 = vld [vmem:[#allocation2 + $0xc8] sm:$0xff] }
  0x1a   :  { %4082 = vmatpush3.bf16.msra.mxu1 %v4079_v6  ;;  %v4111_v31 = vpack.c.bf16 %v135_v30, %v134_v29  ;;  %v3232_v32 = vld [vmem:[#allocation2 + $0x20] ss:$0 sm:$0xff]  ;;  %v237_v39 = vld [vmem:[#allocation2 + $0xb8] sm:$0xff]  ;;  %v240_v43 = vld [vmem:[#allocation2 + $0xd0] sm:$0xff] }
  0x1b   :  { %4084 = vmatprep.subr.bf16.mxu1 %v4083_v9  ;;  %v238_v40 = vld [vmem:[#allocation2 + $0xc0] sm:$0xff]  ;;  %v4119_v44 = vpack.c.bf16 %v240_v43, %v239_v41  ;;  %v241_v45 = vld [vmem:[#allocation2 + $0xd8] sm:$0xff]  ;;  %v3235_v48 = vld [vmem:[#allocation2 + $0xa8] ss:$0 sm:$0xff] }
  0x1c   :  { %v4115_v42 = vpack.c.bf16 %v238_v40, %v237_v39  ;;  %v242_v46 = vld [vmem:[#allocation2 + $0xe0] sm:$0xff]  ;;  %v243_v55 = vld [vmem:[#allocation2 + $0xe8] sm:$0xff]  ;;  %v244_v56 = vld [vmem:[#allocation2 + $0xf0] sm:$0xff] }
  0x1d   :  { %3552 = vmatmul.mubr.msk.f32.vlgmr.msra.gmra.mrb[0].mxu1 %vm36_vm0, %v26_v12  ;;  %v4123_v47 = vpack.c.bf16 %v242_v46, %v241_v45  ;;  %v4127_v57 = vpack.c.bf16 %v244_v56, %v243_v55  ;;  %v245_v58 = vld [vmem:[#allocation2 + $0xf8] sm:$0xff]  ;;  %v246_v59 = vld [vmem:[#allocation2 + $0x100] sm:$0xff]  ;;  %v247_v61 = vld [vmem:[#allocation2 + $0x108] sm:$0xff] }
  0x1e   :  { %4086 = vmatpush3.bf16.msra.mxu1 %v4083_v9  ;;  %4116 = vmatprep.subr.bf16.mxu0 %v4115_v42  ;;  %v4131_v60 = vpack.c.bf16 %v246_v59, %v245_v58  ;;  %v248_v62 = vld [vmem:[#allocation2 + $0x110] sm:$0xff]  ;;  %v249_v63 = vld [vmem:[#allocation2 + $0x118] sm:$0xff]  ;;  %v250_v1 = vld [vmem:[#allocation2 + $0x120] sm:$0xff] }
  0x1f   :  { %4088 = vmatprep.subr.bf16.mxu1 %v4087_v13  ;;  %4118 = vmatpush3.bf16.msra.mxu0 %v4115_v42  ;;  %v4135_v0 = vpack.c.bf16 %v248_v62, %v247_v61  ;;  %v4139_v2 = vpack.c.bf16 %v250_v1, %v249_v63  ;;  %v251_v3 = vld [vmem:[#allocation2 + $0x128] sm:$0xff]  ;;  %v252_v4 = vld [vmem:[#allocation2 + $0x130] sm:$0xff]  ;;  %v3237_v20 = vld [vmem:[#allocation2 + $0x138] ss:$0 sm:$0xff] }
  0x20   :  { %4120 = vmatprep.subr.bf16.mxu0 %v4119_v44  ;;  %v4143_v5 = vpack.c.bf16 %v252_v4, %v251_v3 }
  0x22   :  { %4090 = vmatpush3.bf16.msra.mxu1 %v4087_v13  ;;  %v3236_v13 = vld [vmem:[#allocation2 + $0xb0] ss:$0 sm:$0xff] }
  0x23   :  { %4092 = vmatprep.subr.bf16.mxu1 %v4091_v16  ;;  %4122 = vmatpush3.bf16.msra.mxu0 %v4119_v44 }
  0x24   :  { %4124 = vmatprep.subr.bf16.mxu0 %v4123_v47 }
  0x26   :  { %4094 = vmatpush3.bf16.msra.mxu1 %v4091_v16 }
  0x27   :  { %4096 = vmatprep.subr.bf16.mxu1 %v4095_v19  ;;  %4126 = vmatpush3.bf16.msra.mxu0 %v4123_v47 }
  0x28   :  { %4128 = vmatprep.subr.bf16.mxu0 %v4127_v57 }
  0x2a   :  { %4098 = vmatpush3.bf16.msra.mxu1 %v4095_v19  ;;  %v4565_v19 = vmov 0.0  }
  0x2b   :  { %4100 = vmatprep.subr.bf16.mxu1 %v4099_v22  ;;  %4130 = vmatpush3.bf16.msra.mxu0 %v4127_v57 }
  0x2c   :  { %4132 = vmatprep.subr.bf16.mxu0 %v4131_v60 }
  0x2e   :  { %4102 = vmatpush3.bf16.msra.mxu1 %v4099_v22 }
  0x2f   :  { %4104 = vmatprep.subr.bf16.mxu1 %v4103_v25  ;;  %4134 = vmatpush3.bf16.msra.mxu0 %v4131_v60 }
  0x30   :  { %4136 = vmatprep.subr.bf16.mxu0 %v4135_v0 }
  0x32   :  { %4106 = vmatpush3.bf16.msra.mxu1 %v4103_v25 }
  0x33   :  { %4108 = vmatprep.subr.bf16.mxu1 %v4107_v28  ;;  %4138 = vmatpush3.bf16.msra.mxu0 %v4135_v0 }
  0x34   :  { %4140 = vmatprep.subr.bf16.mxu0 %v4139_v2 }
  0x36   :  { %4110 = vmatpush3.bf16.msra.mxu1 %v4107_v28 }
  0x37   :  { %4112 = vmatprep.subr.bf16.mxu1 %v4111_v31  ;;  %4142 = vmatpush3.bf16.msra.mxu0 %v4139_v2 }
  0x38   :  { %4144 = vmatprep.subr.bf16.mxu0 %v4143_v5 }
  0x3a   :  { %4114 = vmatpush3.bf16.msra.mxu1 %v4111_v31 }
  0x3b   :  { %4146 = vmatpush3.bf16.msra.mxu0 %v4143_v5  ;;  %3624 = vmatprep.subr.mxu1 %v4565_v19 }
  0xf0   :  { %v3553_v33 = vpop.f32.mrb[0].mxu1 }
  0xf1   :  { %v115_v34 = vadd.f32 %v3553_v33, %v3232_v32  ;;  %v109_v35 = vpop.f32.mrb[1].mxu1 }
  0xf2   :  { %v110_v36 = vadd.f32 %v3232_v32, %v109_v35 }
  0xf3   :  { %v119_v38 = vmax.f32 %v115_v34, 0.0 }
  0xf4   :  { %v118_v37 = vmax.f32 %v110_v36, 0.0 }
  0xf6   :  { %3586 = vmatprep.mubr.f32.mxu1 %v118_v37 }
  0xf7   :  { %3587 = vmatmul.mubr.f32.vlgmr.msra.gmra.mrb[2].mxu1 %v119_v38 }
  0xf8   :  { %3626 = vmatprep.mubr.msk.f32.mxu1 %vm4566_vm1, %v4565_v19 }
 0x1ca   :  { %v3588_v49 = vpop.f32.mrb[2].mxu1 }
 0x1cb   :  { %v207_v50 = vpop.f32.mrb[3].mxu1  ;;  %v4610_v52 = vadd.f32 %v3588_v49, %v3235_v48 }
 0x1cc   :  { %v4608_v51 = vadd.f32 %v3235_v48, %v207_v50 }
 0x1cd   :  { %v218_v54 = vmul.f32 %v4610_v52, %v4610_v52 }
 0x1ce   :  { %v217_v53 = vmul.f32 %v4608_v51, %v4608_v51 }
 0x1d0   :  { %219 = vadd.xlane.f32.xlu0 %v217_v53 }
 0x1d4   :  { %221 = vadd.xlane.f32.xlu0 %v218_v54 }
 0x25d   :  { %v220_v6 = vpop.xlane.xlu0 %219 }
 0x25e   :  { %v223_v7 = vmul.f32 0.03125, %v220_v6 }
 0x260   :  { %v225_v8 = vadd.f32 1e-06, %v223_v7 }
 0x261   :  { %v222_v9 = vpop.xlane.xlu0 %221 }
 0x262   :  { %4470 = vrsqrt.f32 %v225_v8  ;;  %v224_v10 = vmul.f32 0.03125, %v222_v9 }
 0x264   :  { %v226_v11 = vadd.f32 1e-06, %v224_v10 }
 0x266   :  { %4472 = vrsqrt.f32 %v226_v11 }
 0x26c   :  { %v4471_v12 = vpop.eup %4470 }
 0x26d   :  { %v229_v14 = vmul.f32 %v4471_v12, %v4608_v51 }
 0x26f   :  { %v235_v15 = vmul.f32 %v3236_v13, %v229_v14  ;;  %v694_v14 = vld [vmem:[#allocation2 + $0x148] sm:$0xff] }
 0x270   :  { %v4473_v16 = vpop.eup %4472 }
 0x271   :  { %v230_v17 = vmul.f32 %v4473_v16, %v4610_v52  ;;  %3621 = vmatprep.mubr.f32.mxu0 %v235_v15  ;;  %v4572_v16 = vmov 0.0|0.0  }
 0x272   :  { %4147 = vmatprep.subr.bf16.mxu0 %v4572_v16 }
 0x273   :  { %v236_v18 = vmul.f32 %v3236_v13, %v230_v17  ;;  %v693_v13 = vld [vmem:[#allocation2 + $0x140] sm:$0xff]  ;;  %v695_v17 = vld [vmem:[#allocation2 + $0x150] sm:$0xff] }
 0x274   :  { %v4151_v15 = vpack.c.bf16 %v694_v14, %v693_v13 }
 0x275   :  { %3622 = vmatmul.mubr.f32.vlgmr.msra.gmra.mrb[0].mxu0 %v236_v18  ;;  %v696_v18 = vld [vmem:[#allocation2 + $0x158] sm:$0xff] }
 0x276   :  { %3658 = vmatprep.mubr.msk.f32.mxu0 %vm4566_vm1, %v4565_v19 }
 0x348   :  { %v3623_v21 = vpop.f32.mrb[0].mxu0 }
 0x349   :  { %v324_v22 = vpop.f32.mrb[1].mxu0  ;;  %v4631_v24 = vadd.f32 %v3623_v21, %v3237_v20 }
 0x34a   :  { %v4623_v23 = vadd.f32 %v3237_v20, %v324_v22  ;;  %v4148_v20 = vpack.c.bf16 %v696_v18, %v695_v17 }
 0x34c   :  { %411 = vrot.lane.b32.xlu0 %v4623_v23, %s4567_s0  ;;  %334 = vrot.lane.b32.xlu1 %v4623_v23, %s4568_s26 }
 0x34d   :  { %4149 = vmatpush3.bf16.msra.mxu0 %v4148_v20 }
 0x34e   :  { %3668 = vmatprep.subr.mxu0 %v4565_v19 }
 0x350   :  { %413 = vrot.lane.b32.xlu1 %v4623_v23, %s4569_s27 }
 0x354   :  { %490 = vrot.lane.b32.xlu1 %v4631_v24, %s4568_s26 }
 0x358   :  { %568 = vrot.lane.b32.xlu1 %v4631_v24, %s4569_s27 }
 0x35c   :  { %566 = vrot.lane.b32.xlu1 %v4631_v24, %s4567_s0 }
 0x3be   :  { %v335_v25 = vpop.permute.xlu1 %334  ;;  %v412_v27 = vpop.permute.xlu0 %411 }
 0x3bf   :  { %3625 = vmatpush3.xpose.msk.msra.mxu1 %vm336_vm2, %v335_v25 }
 0x3c0   :  { %3629 = vmatprep.subr.mxu1 %v4565_v19 }
 0x3c2   :  { %3627 = vmatmul.mubr.msk.f32.vlgmr.msra.gmra.mrb[4].mxu1 %vm336_vm2, %v4623_v23  ;;  %v414_v26 = vpop.permute.xlu1 %413 }
 0x3c3   :  { %3630 = vmatpush3.xpose.msk.msra.mxu1 %vm336_vm2, %v414_v26  ;;  %3631 = vmatprep.mubr.msk.f32.mxu1 %vm4566_vm1, %v4565_v19 }
 0x3c4   :  { %3634 = vmatprep.subr.mxu1 %v4565_v19 }
 0x3c6   :  { %3632 = vmatmul.mubr.msk.f32.vlgmr.msra.gmra.mrb[6].mxu1 %vm336_vm2, %v412_v27  ;;  %v491_v28 = vpop.permute.xlu1 %490 }
 0x3c7   :  { %3635 = vmatpush3.xpose.msk.msra.mxu1 %vm336_vm2, %v491_v28  ;;  %3636 = vmatprep.mubr.msk.f32.mxu1 %vm4566_vm1, %v4565_v19 }
 0x3c8   :  { %3639 = vmatprep.subr.mxu1 %v4565_v19 }
 0x3ca   :  { %3637 = vmatmul.mubr.msk.f32.vlgmr.msra.gmra.mrb[8].mxu1 %vm336_vm2, %v4631_v24  ;;  %v569_v29 = vpop.permute.xlu1 %568 }
 0x3cb   :  { %3640 = vmatpush3.xpose.msk.msra.mxu1 %vm336_vm2, %v569_v29  ;;  %3641 = vmatprep.mubr.msk.f32.mxu1 %vm4566_vm1, %v4565_v19 }
 0x3cc   :  { %3644 = vmatprep.subr.mxu1 %v4565_v19 }
 0x3ce   :  { %v567_v30 = vpop.permute.xlu1 %566 }
 0x3cf   :  { %3642 = vmatmul.mubr.msk.f32.vlgmr.msra.gmra.mrb[10].mxu1 %vm336_vm2, %v567_v30 }
 0x3d0   :  { %3646 = vmatprep.mubr.msk.f32.mxu1 %vm4566_vm1, %v4565_v19 }
 0x495   :  { %v407_v31 = vpop.f32.mrb[4].mxu1 }
 0x496   :  { %v644_v32 = vmul.f32 0.25, %v407_v31  ;;  %v3628_v33 = vpop.f32.mrb[5].mxu1 }
 0x498   :  { %v649_v34 = vsel %vm648_vm3, %v644_v32, -inf }
 0x499   :  { %650 = vmax.xlane.f32.xlu1 %v649_v34  ;;  %v485_v35 = vpop.f32.mrb[6].mxu1 }
 0x49a   :  { %v645_v36 = vmul.f32 0.25, %v485_v35  ;;  %v3633_v37 = vpop.f32.mrb[7].mxu1 }
 0x49c   :  { %v652_v38 = vsel %vm648_vm3, %v645_v36, -inf }
 0x49d   :  { %653 = vmax.xlane.f32.xlu0 %v652_v38  ;;  %v562_v39 = vpop.f32.mrb[8].mxu1 }
 0x49e   :  { %v3638_v40 = vpop.f32.mrb[9].mxu1  ;;  %v646_v61 = vmul.f32 0.25, %v562_v39 }
 0x49f   :  { %v4703_v40 = vld [vmem:[#allocation2 + $0x160] ss:$0 sm:$0xff] }
 0x4a0   :  { %v655_v62 = vsel %vm648_vm3, %v646_v61, -inf }
 0x4a2   :  { %v640_v41 = vpop.f32.mrb[10].mxu1 }
 0x4a3   :  { %v3643_v42 = vpop.f32.mrb[11].mxu1  ;;  %v647_v43 = vmul.f32 0.25, %v640_v41 }
 0x4a5   :  { %v658_v44 = vsel %vm648_vm3, %v647_v43, -inf }
 0x4b3   :  { %697 = vrot.lane.b32.xlu0 %v4623_v23, %s4570_s28 }
 0x4d2   :  { %659 = vmax.xlane.f32.xlu0 %v658_v44 }
 0x526   :  { %v651_v45 = vpop.xlane.xlu1 %650 }
 0x527   :  { %v661_v46 = vsub.f32 %v644_v32, %v651_v45 }
 0x529   :  { %v665_v47 = vmul.f32 1.442695, %v661_v46  ;;  %v1323_v46 = vld [vmem:[#allocation2 + $0x170] sm:$0xff] }
 0x52a   :  { %v654_v48 = vpop.xlane.xlu0 %653 }
 0x52b   :  { %4474 = vpow2.f32 %v665_v47  ;;  %v662_v49 = vsub.f32 %v645_v36, %v654_v48  ;;  %v1324_v47 = vld [vmem:[#allocation2 + $0x178] sm:$0xff]  ;;  %v1414_v48 = vld [vmem:[#allocation2 + $0x1f0] sm:$0xff] }
 0x52d   :  { %v667_v50 = vmul.f32 1.442695, %v662_v49  ;;  %v4159_v49 = vpack.c.bf16 %v1324_v47, %v1323_v46 }
 0x52e   :  { %v698_v53 = vpop.permute.xlu0 %697 }
 0x52f   :  { %4476 = vpow2.f32 %v667_v50  ;;  %3645 = vmatpush3.msra.mxu1 %v698_v53  ;;  %v1415_v50 = vld [vmem:[#allocation2 + $0x1f8] sm:$0xff]  ;;  %v1325_v53 = vld [vmem:[#allocation2 + $0x180] sm:$0xff] }
 0x530   :  { %3649 = vmatprep.subr.mxu1 %v4565_v19 }
 0x535   :  { %v4475_v54 = vpop.eup %4474 }
 0x536   :  { %v673_v55 = vsel %vm648_vm3, %v4475_v54, 0.0 }
 0x537   :  { %674 = vadd.xlane.f32.xlu1 %v673_v55  ;;  %v4191_v55 = vpack.c.bf16 %v1415_v50, %v1414_v48 }
 0x539   :  { %v4477_v56 = vpop.eup %4476 }
 0x53a   :  { %v676_v57 = vsel %vm648_vm3, %v4477_v56, 0.0 }
 0x53b   :  { %677 = vadd.xlane.f32.xlu1 %v676_v57  ;;  %v1417_v57 = vld [vmem:[#allocation2 + $0x208] sm:$0xff] }
 0x54c   :  { %773 = vrot.lane.b32.xlu1 %v4623_v23, %s4571_s29 }
 0x55f   :  { %v660_v58 = vpop.xlane.xlu0 %659 }
 0x560   :  { %v664_v59 = vsub.f32 %v647_v43, %v660_v58  ;;  %v1327_v58 = vld [vmem:[#allocation2 + $0x190] sm:$0xff] }
 0x562   :  { %v671_v60 = vmul.f32 1.442695, %v664_v59 }
 0x564   :  { %4478 = vpow2.f32 %v671_v60  ;;  %v1328_v60 = vld [vmem:[#allocation2 + $0x198] sm:$0xff] }
 0x56e   :  { %v4479_v63 = vpop.eup %4478 }
 0x56f   :  { %v682_v0 = vsel %vm648_vm3, %v4479_v63, 0.0 }
 0x570   :  { %656 = vmax.xlane.f32.xlu1 %v655_v62  ;;  %v1419_v62 = vld [vmem:[#allocation2 + $0x218] sm:$0xff] }
 0x574   :  { %683 = vadd.xlane.f32.xlu1 %v682_v0 }
 0x585   :  { %1071 = vrot.lane.b32.xlu1 %v4631_v24, %s4571_s29 }
 0x5c4   :  { %v675_v1 = vpop.xlane.xlu1 %674 }
 0x5c5   :  { %4480 = vrcp.f32 %v675_v1  ;;  %v1329_v1 = vld [vmem:[#allocation2 + $0x1a0] sm:$0xff] }
 0x5c8   :  { %v678_v2 = vpop.xlane.xlu1 %677 }
 0x5c9   :  { %4482 = vrcp.f32 %v678_v2  ;;  %v1330_v2 = vld [vmem:[#allocation2 + $0x1a8] sm:$0xff] }
 0x5cc   :  { %v774_v5 = vpop.permute.xlu1 %773 }
 0x5cf   :  { %v4481_v3 = vpop.eup %4480 }
 0x5d0   :  { %v689_v4 = vmul.f32 %v4481_v3, %v4475_v54  ;;  %v1326_v54 = vld [vmem:[#allocation2 + $0x188] sm:$0xff]  ;;  %v1420_v3 = vld [vmem:[#allocation2 + $0x220] sm:$0xff] }
 0x5d2   :  { %3647 = vmatmul.mubr.msk.f32.vlgmr.msra.gmra.mrb[12].mxu1 %vm648_vm3, %v689_v4  ;;  %v1421_v4 = vld [vmem:[#allocation2 + $0x228] sm:$0xff] }
 0x5d3   :  { %v4483_v6 = vpop.eup %4482  ;;  %3650 = vmatpush3.msra.mxu1 %v774_v5  ;;  %3651 = vmatprep.mubr.msk.f32.mxu1 %vm4566_vm1, %v4565_v19  ;;  %v4171_v5 = vpack.c.bf16 %v1330_v2, %v1329_v1  ;;  %v1528_v1 = vld [vmem:[#allocation2 + $0x2a8] sm:$0xff] }
 0x5d4   :  { %v690_v7 = vmul.f32 %v4483_v6, %v4477_v56  ;;  %4150 = vmatprep.subr.bf16.mxu1 %v4572_v16  ;;  %v1416_v56 = vld [vmem:[#allocation2 + $0x200] sm:$0xff]  ;;  %v4203_v6 = vpack.c.bf16 %v1421_v4, %v1420_v3  ;;  %v1529_v3 = vld [vmem:[#allocation2 + $0x2b0] sm:$0xff]  ;;  %v1530_v4 = vld [vmem:[#allocation2 + $0x2b8] sm:$0xff] }
 0x5d5   :  { %v4195_v59 = vpack.c.bf16 %v1417_v57, %v1416_v56  ;;  %v1522_v56 = vld [vmem:[#allocation2 + $0x278] sm:$0xff] }
 0x5d6   :  { %3652 = vmatmul.mubr.msk.f32.vlgmr.msra.gmra.mrb[14].mxu1 %vm648_vm3, %v690_v7 }
 0x5d7   :  { %3665 = vmatprep.mubr.msk.f32.mxu1 %vm4566_vm1, %v4565_v19  ;;  %4152 = vmatpush3.bf16.msra.mxu1 %v4151_v15 }
 0x5d8   :  { %3673 = vmatprep.subr.mxu1 %v4565_v19 }
 0x5fd   :  { %v657_v8 = vpop.xlane.xlu1 %656 }
 0x5fe   :  { %v663_v9 = vsub.f32 %v646_v61, %v657_v8  ;;  %v1418_v61 = vld [vmem:[#allocation2 + $0x210] sm:$0xff] }
 0x5ff   :  { %v4199_v0 = vpack.c.bf16 %v1419_v62, %v1418_v61  ;;  %v1525_v61 = vld [vmem:[#allocation2 + $0x290] sm:$0xff]  ;;  %v1526_v62 = vld [vmem:[#allocation2 + $0x298] sm:$0xff] }
 0x600   :  { %v669_v10 = vmul.f32 1.442695, %v663_v9 }
 0x601   :  { %v684_v21 = vpop.xlane.xlu1 %683 }
 0x602   :  { %4484 = vpow2.f32 %v669_v10 }
 0x603   :  { %4486 = vrcp.f32 %v684_v21 }
 0x605   :  { %v1072_v26 = vpop.permute.xlu1 %1071 }
 0x60c   :  { %v4485_v11 = vpop.eup %4484 }
 0x60d   :  { %v679_v12 = vsel %vm648_vm3, %v4485_v11, 0.0  ;;  %v4487_v23 = vpop.eup %4486 }
 0x60e   :  { %680 = vadd.xlane.f32.xlu0 %v679_v12 }
 0x624   :  { %995 = vrot.lane.b32.xlu0 %v4631_v24, %s4570_s28  ;;  %v692_v24 = vmul.f32 %v4487_v23, %v4479_v63  ;;  %v4167_v63 = vpack.c.bf16 %v1328_v60, %v1327_v58  ;;  %v1523_v58 = vld [vmem:[#allocation2 + $0x280] sm:$0xff] }
 0x69b   :  { %v681_v22 = vpop.xlane.xlu0 %680 }
 0x69c   :  { %4488 = vrcp.f32 %v681_v22 }
 0x69f   :  { %v996_v30 = vpop.permute.xlu0 %995 }
 0x6a5   :  { %v769_v25 = vpop.f32.mrb[12].mxu1 }
 0x6a6   :  { %v3648_v27 = vpop.f32.mrb[13].mxu1  ;;  %3666 = vmatmul.mubr.msk.f32.vlgmr.msra.gmra.mrb[16].mxu1 %vm336_vm2, %v769_v25  ;;  %v4489_v28 = vpop.eup %4488  ;;  %v1331_v25 = vld [vmem:[#allocation2 + $0x1b0] sm:$0xff] }
 0x6a7   :  { %3674 = vmatpush3.msra.mxu1 %v1072_v26  ;;  %3675 = vmatprep.mubr.msk.f32.mxu1 %vm4566_vm1, %v4565_v19  ;;  %v691_v32 = vmul.f32 %v4489_v28, %v4485_v11  ;;  %v3255_v11 = vld [vmem:[#allocation2 + $0x168] ss:$0 sm:$0xff]  ;;  %v1332_v26 = vld [vmem:[#allocation2 + $0x1b8] sm:$0xff]  ;;  %v1422_v27 = vld [vmem:[#allocation2 + $0x230] sm:$0xff] }
 0x6a8   :  { %4156 = vmatprep.subr.bf16.mxu1 %v4572_v16  ;;  %v1423_v28 = vld [vmem:[#allocation2 + $0x238] sm:$0xff] }
 0x6a9   :  { %v845_v29 = vpop.f32.mrb[14].mxu1 }
 0x6aa   :  { %v3653_v31 = vpop.f32.mrb[15].mxu1  ;;  %3659 = vmatmul.mubr.msk.f32.vlgmr.msra.gmra.mrb[2].mxu0 %vm336_vm2, %v845_v29  ;;  %3676 = vmatmul.mubr.msk.f32.vlgmr.msra.gmra.mrb[18].mxu1 %vm648_vm3, %v692_v24  ;;  %v4175_v24 = vpack.c.bf16 %v1332_v26, %v1331_v25  ;;  %v4207_v29 = vpack.c.bf16 %v1423_v28, %v1422_v27 }
 0x6ab   :  { %3669 = vmatpush3.msra.mxu0 %v996_v30  ;;  %3670 = vmatprep.mubr.msk.f32.mxu0 %vm4566_vm1, %v4565_v19  ;;  %v1333_v30 = vld [vmem:[#allocation2 + $0x1c0] sm:$0xff]  ;;  %v1334_v31 = vld [vmem:[#allocation2 + $0x1c8] sm:$0xff] }
 0x6ac   :  { %4153 = vmatprep.subr.bf16.mxu0 %v4572_v16  ;;  %4158 = vmatpush3.bf16.msra.mxu1 %v4151_v15 }
 0x6ad   :  { %3689 = vmatprep.mubr.msk.f32.mxu1 %vm4566_vm1, %v4565_v19  ;;  %4192 = vmatprep.subr.bf16.mxu1 %v4191_v55 }
 0x6ae   :  { %3671 = vmatmul.mubr.msk.f32.vlgmr.msra.gmra.mrb[4].mxu0 %vm648_vm3, %v691_v32  ;;  %v1424_v32 = vld [vmem:[#allocation2 + $0x240] sm:$0xff] }
 0x6af   :  { %4155 = vmatpush3.bf16.msra.mxu0 %v4148_v20  ;;  %3682 = vmatprep.mubr.msk.f32.mxu0 %vm4566_vm1, %v4565_v19 }
 0x6b0   :  { %4160 = vmatprep.subr.bf16.mxu0 %v4159_v49 }
 0x779   :  { %v991_v33 = vpop.f32.mrb[16].mxu1 }
 0x77a   :  { %v3667_v34 = vpop.f32.mrb[17].mxu1 }
 0x77b   :  { %v1335_v34 = vld [vmem:[#allocation2 + $0x1d0] sm:$0xff] }
 0x77d   :  { %v918_v35 = vpop.f32.mrb[2].mxu0  ;;  %v1143_v36 = vpop.f32.mrb[18].mxu1 }
 0x77e   :  { %v992_v37 = vadd.f32 %v991_v33, %v918_v35  ;;  %v3660_v38 = vpop.f32.mrb[3].mxu0  ;;  %v3677_v39 = vpop.f32.mrb[19].mxu1  ;;  %3683 = vmatmul.mubr.msk.f32.vlgmr.msra.gmra.mrb[6].mxu0 %vm336_vm2, %v1143_v36  ;;  %v1425_v33 = vld [vmem:[#allocation2 + $0x248] sm:$0xff]  ;;  %v1336_v35 = vld [vmem:[#allocation2 + $0x1d8] sm:$0xff] }
 0x77f   :  { %4162 = vmatpush3.bf16.msra.mxu0 %v4159_v49  ;;  %v4211_v36 = vpack.c.bf16 %v1425_v33, %v1424_v32  ;;  %v1426_v38 = vld [vmem:[#allocation2 + $0x250] sm:$0xff]  ;;  %v1427_v39 = vld [vmem:[#allocation2 + $0x258] sm:$0xff] }
 0x780   :  { %v1293_v41 = vadd.f32 %v992_v37, %v4608_v51  ;;  %v4163_v51 = vpack.c.bf16 %v1326_v54, %v1325_v53  ;;  %v4183_v37 = vpack.c.bf16 %v1336_v35, %v1335_v34  ;;  %v1635_v33 = vld [vmem:[#allocation2 + $0x2f8] sm:$0xff]  ;;  %v1636_v34 = vld [vmem:[#allocation2 + $0x300] sm:$0xff]  ;;  %v1637_v35 = vld [vmem:[#allocation2 + $0x308] sm:$0xff] }
 0x781   :  { %v1067_v42 = vpop.f32.mrb[4].mxu0 }
 0x782   :  { %v4707_v43 = vadd.f32 %v4703_v40, %v1293_v41  ;;  %v3672_v44 = vpop.f32.mrb[5].mxu0  ;;  %3690 = vmatmul.mubr.msk.f32.vlgmr.msra.gmra.mrb[20].mxu1 %vm336_vm2, %v1067_v42  ;;  %4164 = vmatprep.subr.bf16.mxu0 %v4163_v51  ;;  %v1337_v41 = vld [vmem:[#allocation2 + $0x1e0] sm:$0xff]  ;;  %v1338_v42 = vld [vmem:[#allocation2 + $0x1e8] sm:$0xff] }
 0x783   :  { %4194 = vmatpush3.bf16.msra.mxu1 %v4191_v55  ;;  %4166 = vmatpush3.bf16.msra.mxu0 %v4163_v51  ;;  %v1428_v44 = vld [vmem:[#allocation2 + $0x260] sm:$0xff]  ;;  %v4187_v46 = vpack.c.bf16 %v1338_v42, %v1337_v41  ;;  %v1521_v51 = vld [vmem:[#allocation2 + $0x270] sm:$0xff] }
 0x784   :  { %v1303_v45 = vmul.f32 %v4707_v43, %v4707_v43  ;;  %4196 = vmatprep.subr.bf16.mxu1 %v4195_v59  ;;  %4168 = vmatprep.subr.bf16.mxu0 %v4167_v63  ;;  %v4223_v57 = vpack.c.bf16 %v1522_v56, %v1521_v51  ;;  %v1645_v51 = vld [vmem:[#allocation2 + $0x348] sm:$0xff]  ;;  %v1646_v56 = vld [vmem:[#allocation2 + $0x350] sm:$0xff] }
 0x786   :  { %1305 = vadd.xlane.f32.xlu1 %v1303_v45  ;;  %v1429_v45 = vld [vmem:[#allocation2 + $0x268] sm:$0xff] }
 0x787   :  { %4198 = vmatpush3.bf16.msra.mxu1 %v4195_v59  ;;  %4170 = vmatpush3.bf16.msra.mxu0 %v4167_v63  ;;  %v4219_v47 = vpack.c.bf16 %v1429_v45, %v1428_v44  ;;  %v1524_v59 = vld [vmem:[#allocation2 + $0x288] sm:$0xff]  ;;  %v4231_v63 = vpack.c.bf16 %v1526_v62, %v1525_v61  ;;  %v1650_v61 = vld [vmem:[#allocation2 + $0x370] sm:$0xff] }
 0x788   :  { %4200 = vmatprep.subr.bf16.mxu1 %v4199_v0  ;;  %4172 = vmatprep.subr.bf16.mxu0 %v4171_v5  ;;  %v4227_v60 = vpack.c.bf16 %v1524_v59, %v1523_v58  ;;  %v1648_v58 = vld [vmem:[#allocation2 + $0x360] sm:$0xff] }
 0x78b   :  { %4202 = vmatpush3.bf16.msra.mxu1 %v4199_v0  ;;  %4174 = vmatpush3.bf16.msra.mxu0 %v4171_v5  ;;  %v1527_v0 = vld [vmem:[#allocation2 + $0x2a0] sm:$0xff]  ;;  %v4239_v5 = vpack.c.bf16 %v1530_v4, %v1529_v3 }
 0x78c   :  { %4204 = vmatprep.subr.bf16.mxu1 %v4203_v6  ;;  %4176 = vmatprep.subr.bf16.mxu0 %v4175_v24  ;;  %v4235_v2 = vpack.c.bf16 %v1528_v1, %v1527_v0 }
 0x78f   :  { %4206 = vmatpush3.bf16.msra.mxu1 %v4203_v6  ;;  %4178 = vmatpush3.bf16.msra.mxu0 %v4175_v24  ;;  %v1531_v6 = vld [vmem:[#allocation2 + $0x2c0] sm:$0xff] }
 0x790   :  { %4208 = vmatprep.subr.bf16.mxu1 %v4207_v29 }
 0x793   :  { %4210 = vmatpush3.bf16.msra.mxu1 %v4207_v29 }
 0x794   :  { %4212 = vmatprep.subr.bf16.mxu1 %v4211_v36 }
 0x797   :  { %4214 = vmatpush3.bf16.msra.mxu1 %v4211_v36  ;;  %v4255_v36 = vpack.c.bf16 %v1636_v34, %v1635_v33 }
 0x813   :  { %v1306_v7 = vpop.xlane.xlu1 %1305 }
 0x814   :  { %v1309_v8 = vmul.f32 0.03125, %v1306_v7  ;;  %v1532_v7 = vld [vmem:[#allocation2 + $0x2c8] sm:$0xff] }
 0x816   :  { %v1311_v9 = vadd.f32 1e-06, %v1309_v8  ;;  %v4243_v8 = vpack.c.bf16 %v1532_v7, %v1531_v6  ;;  %v3258_v7 = vld [vmem:[#allocation2 + $0x2f0] ss:$0 sm:$0xff] }
 0x818   :  { %4490 = vrsqrt.f32 %v1311_v9  ;;  %v1533_v9 = vld [vmem:[#allocation2 + $0x2d0] sm:$0xff] }
 0x822   :  { %v4491_v10 = vpop.eup %4490 }
 0x823   :  { %v1315_v12 = vmul.f32 %v4491_v10, %v4707_v43  ;;  %v1534_v10 = vld [vmem:[#allocation2 + $0x2d8] sm:$0xff] }
 0x825   :  { %v1321_v13 = vmul.f32 %v3255_v11, %v1315_v12  ;;  %v1535_v12 = vld [vmem:[#allocation2 + $0x2e0] sm:$0xff] }
 0x827   :  { %3724 = vmatprep.mubr.f32.mxu0 %v1321_v13  ;;  %3759 = vmatprep.mubr.f32.mxu1 %v1321_v13  ;;  %v1536_v13 = vld [vmem:[#allocation2 + $0x2e8] sm:$0xff] }
 0x851   :  { %v1216_v14 = vpop.f32.mrb[6].mxu0 }
 0x852   :  { %v3684_v15 = vpop.f32.mrb[7].mxu0 }
 0x855   :  { %v1289_v17 = vpop.f32.mrb[20].mxu1 }
 0x856   :  { %v1290_v18 = vadd.f32 %v1289_v17, %v1216_v14  ;;  %v3691_v20 = vpop.f32.mrb[21].mxu1  ;;  %v4251_v14 = vpack.c.bf16 %v1536_v13, %v1535_v12  ;;  %v3259_v12 = vld [vmem:[#allocation2 + $0x378] ss:$0 sm:$0xff] }
 0x858   :  { %v1294_v21 = vadd.f32 %v1290_v18, %v4610_v52  ;;  %v4179_v52 = vpack.c.bf16 %v1334_v31, %v1333_v30 }
 0x85a   :  { %v4715_v22 = vadd.f32 %v4703_v40, %v1294_v21  ;;  %4180 = vmatprep.subr.bf16.mxu0 %v4179_v52  ;;  %v4215_v40 = vpack.c.bf16 %v1427_v39, %v1426_v38  ;;  %v1639_v39 = vld [vmem:[#allocation2 + $0x318] sm:$0xff] }
 0x85b   :  { %4182 = vmatpush3.bf16.msra.mxu0 %v4179_v52 }
 0x85c   :  { %v1304_v23 = vmul.f32 %v4715_v22, %v4715_v22  ;;  %4184 = vmatprep.subr.bf16.mxu0 %v4183_v37  ;;  %4216 = vmatprep.subr.bf16.mxu1 %v4215_v40 }
 0x85d   :  { %4218 = vmatpush3.bf16.msra.mxu1 %v4215_v40  ;;  %v1640_v40 = vld [vmem:[#allocation2 + $0x320] sm:$0xff] }
 0x85e   :  { %1307 = vadd.xlane.f32.xlu0 %v1304_v23  ;;  %4220 = vmatprep.subr.bf16.mxu1 %v4219_v47  ;;  %v4263_v41 = vpack.c.bf16 %v1640_v40, %v1639_v39 }
 0x85f   :  { %4186 = vmatpush3.bf16.msra.mxu0 %v4183_v37  ;;  %v1638_v37 = vld [vmem:[#allocation2 + $0x310] sm:$0xff] }
 0x860   :  { %4188 = vmatprep.subr.bf16.mxu0 %v4187_v46  ;;  %v4259_v38 = vpack.c.bf16 %v1638_v37, %v1637_v35 }
 0x861   :  { %4222 = vmatpush3.bf16.msra.mxu1 %v4219_v47 }
 0x862   :  { %4256 = vmatprep.subr.bf16.mxu1 %v4255_v36 }
 0x863   :  { %4190 = vmatpush3.bf16.msra.mxu0 %v4187_v46 }
 0x864   :  { %4224 = vmatprep.subr.bf16.mxu0 %v4223_v57 }
 0x8eb   :  { %v1308_v48 = vpop.xlane.xlu0 %1307 }
 0x8ec   :  { %v1310_v49 = vmul.f32 0.03125, %v1308_v48 }
 0x8ee   :  { %v1312_v50 = vadd.f32 1e-06, %v1310_v49  ;;  %v1641_v49 = vld [vmem:[#allocation2 + $0x328] sm:$0xff] }
 0x8f0   :  { %4492 = vrsqrt.f32 %v1312_v50  ;;  %v1642_v50 = vld [vmem:[#allocation2 + $0x330] sm:$0xff] }
 0x8fa   :  { %v4493_v53 = vpop.eup %4492 }
 0x8fb   :  { %v1316_v54 = vmul.f32 %v4493_v53, %v4715_v22  ;;  %v4267_v53 = vpack.c.bf16 %v1642_v50, %v1641_v49 }
 0x8fd   :  { %v1322_v55 = vmul.f32 %v3255_v11, %v1316_v54  ;;  %v4247_v11 = vpack.c.bf16 %v1534_v10, %v1533_v9  ;;  %v1643_v54 = vld [vmem:[#allocation2 + $0x338] sm:$0xff] }
 0x8ff   :  { %3725 = vmatmul.mubr.f32.vlgmr.msra.gmra.mrb[8].mxu0 %v1322_v55  ;;  %3760 = vmatmul.mubr.f32.vlgmr.msra.gmra.mrb[22].mxu1 %v1322_v55 }
 0x900   :  { %4226 = vmatpush3.bf16.msra.mxu0 %v4223_v57  ;;  %4258 = vmatpush3.bf16.msra.mxu1 %v4255_v36  ;;  %v4275_v57 = vpack.c.bf16 %v1646_v56, %v1645_v51 }
 0x901   :  { %4228 = vmatprep.subr.bf16.mxu0 %v4227_v60  ;;  %4260 = vmatprep.subr.bf16.mxu1 %v4259_v38 }
 0x904   :  { %4230 = vmatpush3.bf16.msra.mxu0 %v4227_v60  ;;  %4262 = vmatpush3.bf16.msra.mxu1 %v4259_v38  ;;  %v1649_v60 = vld [vmem:[#allocation2 + $0x368] sm:$0xff] }
 0x905   :  { %4232 = vmatprep.subr.bf16.mxu0 %v4231_v63  ;;  %4264 = vmatprep.subr.bf16.mxu1 %v4263_v41  ;;  %v4283_v62 = vpack.c.bf16 %v1650_v61, %v1649_v60 }
 0x908   :  { %4234 = vmatpush3.bf16.msra.mxu0 %v4231_v63  ;;  %4266 = vmatpush3.bf16.msra.mxu1 %v4263_v41 }
 0x909   :  { %4236 = vmatprep.subr.bf16.mxu0 %v4235_v2  ;;  %4268 = vmatprep.subr.bf16.mxu1 %v4267_v53 }
 0x90c   :  { %4238 = vmatpush3.bf16.msra.mxu0 %v4235_v2  ;;  %4270 = vmatpush3.bf16.msra.mxu1 %v4267_v53 }
 0x90d   :  { %4240 = vmatprep.subr.bf16.mxu0 %v4239_v5 }
 0x910   :  { %4242 = vmatpush3.bf16.msra.mxu0 %v4239_v5 }
 0x911   :  { %4244 = vmatprep.subr.bf16.mxu0 %v4243_v8 }
 0x914   :  { %4246 = vmatpush3.bf16.msra.mxu0 %v4243_v8 }
 0x915   :  { %4248 = vmatprep.subr.bf16.mxu0 %v4247_v11 }
 0x918   :  { %4250 = vmatpush3.bf16.msra.mxu0 %v4247_v11 }
 0x919   :  { %4252 = vmatprep.subr.bf16.mxu0 %v4251_v14 }
 0x91c   :  { %4254 = vmatpush3.bf16.msra.mxu0 %v4251_v14 }
 0x91d   :  { %3832 = vmatprep.subr.mxu0 %v4565_v19 }
 0x9d2   :  { %v3726_v15 = vpop.f32.mrb[8].mxu0  ;;  %v3761_v17 = vpop.f32.mrb[22].mxu1 }
 0x9d3   :  { %v3257_v18 = vmul.f32 -1.442695, %v3726_v15  ;;  %v1405_v20 = vpop.f32.mrb[9].mxu0  ;;  %v1496_v21 = vpop.f32.mrb[23].mxu1 }
 0x9d4   :  { %v3256_v23 = vmul.f32 -1.442695, %v1405_v20 }
 0x9d5   :  { %4494 = vpow2.f32 %v3257_v18 }
 0x9d6   :  { %4496 = vpow2.f32 %v3256_v23 }
 0x9df   :  { %v4495_v25 = vpop.eup %4494 }
 0x9e0   :  { %v4497_v26 = vpop.eup %4496  ;;  %v1512_v27 = vadd.f32 1.0, %v4495_v25 }
 0x9e1   :  { %v1511_v24 = vadd.f32 1.0, %v4497_v26 }
 0x9e2   :  { %4498 = vrcp.f32 %v1512_v27 }
 0x9e3   :  { %4500 = vrcp.f32 %v1511_v24 }
 0x9ec   :  { %v4499_v28 = vpop.eup %4498 }
 0x9ed   :  { %v4501_v29 = vpop.eup %4500  ;;  %v1518_v30 = vmul.f32 %v4499_v28, %v3726_v15 }
 0x9ee   :  { %v1517_v31 = vmul.f32 %v4501_v29, %v1405_v20 }
 0x9ef   :  { %v1520_v32 = vmul.f32 %v3761_v17, %v1518_v30 }
 0x9f0   :  { %v1519_v52 = vmul.f32 %v1517_v31, %v1496_v21 }
 0x9f2   :  { %3794 = vmatprep.mubr.f32.mxu0 %v1519_v52 }
 0x9f3   :  { %3795 = vmatmul.mubr.f32.vlgmr.msra.gmra.mrb[10].mxu0 %v1520_v32 }
 0x9f4   :  { %3834 = vmatprep.mubr.msk.f32.mxu0 %vm4566_vm1, %v4565_v19 }
 0xac6   :  { %v3796_v42 = vpop.f32.mrb[10].mxu0 }
 0xac7   :  { %v4724_v44 = vadd.f32 %v3796_v42, %v4715_v22  ;;  %v1603_v45 = vpop.f32.mrb[11].mxu0  ;;  %v1644_v22 = vld [vmem:[#allocation2 + $0x340] sm:$0xff] }
 0xac8   :  { %v4727_v46 = vadd.f32 %v1603_v45, %v4707_v43  ;;  %v4271_v55 = vpack.c.bf16 %v1644_v22, %v1643_v54  ;;  %v1647_v43 = vld [vmem:[#allocation2 + $0x358] sm:$0xff] }
 0xac9   :  { %v1616_v47 = vmul.f32 %v4724_v44, %v4724_v44  ;;  %v4279_v59 = vpack.c.bf16 %v1648_v58, %v1647_v43 }
 0xaca   :  { %v1615_v48 = vmul.f32 %v4727_v46, %v4727_v46  ;;  %4272 = vmatprep.subr.bf16.mxu1 %v4271_v55 }
 0xacb   :  { %1619 = vadd.xlane.f32.xlu1 %v1616_v47  ;;  %4274 = vmatpush3.bf16.msra.mxu1 %v4271_v55 }
 0xacc   :  { %1617 = vadd.xlane.f32.xlu0 %v1615_v48  ;;  %4276 = vmatprep.subr.bf16.mxu1 %v4275_v57 }
 0xacf   :  { %4278 = vmatpush3.bf16.msra.mxu1 %v4275_v57 }
 0xad0   :  { %4280 = vmatprep.subr.bf16.mxu1 %v4279_v59 }
 0xad3   :  { %4282 = vmatpush3.bf16.msra.mxu1 %v4279_v59 }
 0xad4   :  { %4284 = vmatprep.subr.bf16.mxu1 %v4283_v62 }
 0xad7   :  { %4286 = vmatpush3.bf16.msra.mxu1 %v4283_v62 }
 0xad8   :  { %3837 = vmatprep.subr.mxu1 %v4565_v19 }
 0xb58   :  { %v1620_v63 = vpop.xlane.xlu1 %1619 }
 0xb59   :  { %v1622_v0 = vmul.f32 0.03125, %v1620_v63  ;;  %v1618_v1 = vpop.xlane.xlu0 %1617 }
 0xb5a   :  { %v1621_v2 = vmul.f32 0.03125, %v1618_v1 }
 0xb5b   :  { %v1624_v3 = vadd.f32 1e-06, %v1622_v0 }
 0xb5c   :  { %v1623_v4 = vadd.f32 1e-06, %v1621_v2 }
 0xb5d   :  { %4502 = vrsqrt.f32 %v1624_v3 }
 0xb5e   :  { %4504 = vrsqrt.f32 %v1623_v4 }
 0xb67   :  { %v4503_v5 = vpop.eup %4502 }
 0xb68   :  { %v4505_v6 = vpop.eup %4504  ;;  %v1628_v8 = vmul.f32 %v4503_v5, %v4724_v44 }
 0xb69   :  { %v1627_v9 = vmul.f32 %v4505_v6, %v4727_v46 }
 0xb6a   :  { %v1634_v11 = vmul.f32 %v3258_v7, %v1628_v8  ;;  %v2090_v8 = vld [vmem:[#allocation2 + $0x388] sm:$0xff] }
 0xb6b   :  { %v1633_v10 = vmul.f32 %v3258_v7, %v1627_v9  ;;  %v2089_v7 = vld [vmem:[#allocation2 + $0x380] sm:$0xff] }
 0xb6c   :  { %v4291_v9 = vpack.c.bf16 %v2090_v8, %v2089_v7 }
 0xb6d   :  { %3829 = vmatprep.mubr.f32.mxu1 %v1633_v10  ;;  %v2091_v10 = vld [vmem:[#allocation2 + $0x390] sm:$0xff] }
 0xb6e   :  { %3830 = vmatmul.mubr.f32.vlgmr.msra.gmra.mrb[24].mxu1 %v1634_v11  ;;  %v2092_v11 = vld [vmem:[#allocation2 + $0x398] sm:$0xff] }
 0xb6f   :  { %3839 = vmatprep.mubr.msk.f32.mxu1 %vm4566_vm1, %v4565_v19 }
 0xc41   :  { %v3831_v13 = vpop.f32.mrb[24].mxu1 }
 0xc42   :  { %v1722_v14 = vpop.f32.mrb[25].mxu1  ;;  %v4740_v17 = vadd.f32 %v3831_v13, %v3259_v12 }
 0xc43   :  { %v1723_v15 = vadd.f32 %v3259_v12, %v1722_v14  ;;  %v4288_v12 = vpack.c.bf16 %v2092_v11, %v2091_v10 }
 0xc45   :  { %1810 = vrot.lane.b32.xlu1 %v1723_v15, %s4569_s27  ;;  %1732 = vrot.lane.b32.xlu0 %v1723_v15, %s4568_s26 }
 0xc49   :  { %1808 = vrot.lane.b32.xlu1 %v1723_v15, %s4567_s0  ;;  %1887 = vrot.lane.b32.xlu0 %v4740_v17, %s4568_s26 }
 0xc4d   :  { %1965 = vrot.lane.b32.xlu1 %v4740_v17, %s4569_s27  ;;  %1963 = vrot.lane.b32.xlu0 %v4740_v17, %s4567_s0 }
 0xcb7   :  { %v1811_v18 = vpop.permute.xlu1 %1810  ;;  %v1733_v20 = vpop.permute.xlu0 %1732 }
 0xcb8   :  { %3833 = vmatpush3.xpose.msk.msra.mxu0 %vm336_vm2, %v1733_v20  ;;  %3838 = vmatpush3.xpose.msk.msra.mxu1 %vm336_vm2, %v1811_v18 }
 0xcb9   :  { %3842 = vmatprep.subr.mxu0 %v4565_v19  ;;  %3847 = vmatprep.subr.mxu1 %v4565_v19 }
 0xcbb   :  { %v1809_v21 = vpop.permute.xlu1 %1808  ;;  %3835 = vmatmul.mubr.msk.f32.vlgmr.msra.gmra.mrb[12].mxu0 %vm336_vm2, %v1723_v15  ;;  %v1888_v23 = vpop.permute.xlu0 %1887 }
 0xcbc   :  { %3840 = vmatmul.mubr.msk.f32.vlgmr.msra.gmra.mrb[26].mxu1 %vm336_vm2, %v1809_v21  ;;  %3843 = vmatpush3.xpose.msk.msra.mxu0 %vm336_vm2, %v1888_v23 }
 0xcbd   :  { %3844 = vmatprep.mubr.msk.f32.mxu0 %vm4566_vm1, %v4565_v19  ;;  %3849 = vmatprep.mubr.msk.f32.mxu1 %vm4566_vm1, %v4565_v19 }
 0xcbe   :  { %3852 = vmatprep.subr.mxu0 %v4565_v19 }
 0xcbf   :  { %v1966_v25 = vpop.permute.xlu1 %1965  ;;  %3845 = vmatmul.mubr.msk.f32.vlgmr.msra.gmra.mrb[14].mxu0 %vm336_vm2, %v4740_v17  ;;  %v1964_v26 = vpop.permute.xlu0 %1963 }
 0xcc0   :  { %3848 = vmatpush3.xpose.msk.msra.mxu1 %vm336_vm2, %v1966_v25  ;;  %3854 = vmatprep.mubr.msk.f32.mxu0 %vm4566_vm1, %v4565_v19 }
 0xcc1   :  { %3857 = vmatprep.subr.mxu1 %v4565_v19 }
 0xcc3   :  { %3850 = vmatmul.mubr.msk.f32.vlgmr.msra.gmra.mrb[28].mxu1 %vm336_vm2, %v1964_v26 }
 0xcc4   :  { %3859 = vmatprep.mubr.msk.f32.mxu1 %vm4566_vm1, %v4565_v19 }
 0xd8e   :  { %v1804_v27 = vpop.f32.mrb[12].mxu0 }
 0xd8f   :  { %v2041_v24 = vmul.f32 0.25, %v1804_v27  ;;  %v3836_v28 = vpop.f32.mrb[13].mxu0  ;;  %v1882_v29 = vpop.f32.mrb[26].mxu1 }
 0xd90   :  { %v2042_v30 = vmul.f32 0.25, %v1882_v29  ;;  %v3841_v31 = vpop.f32.mrb[27].mxu1 }
 0xd91   :  { %v2045_v32 = vsel %vm648_vm3, %v2041_v24, -inf }
 0xd92   :  { %2046 = vmax.xlane.f32.xlu1 %v2045_v32  ;;  %v1959_v52 = vpop.f32.mrb[14].mxu0  ;;  %v2048_v33 = vsel %vm648_vm3, %v2042_v30, -inf }
 0xd93   :  { %2049 = vmax.xlane.f32.xlu0 %v2048_v33  ;;  %v3846_v34 = vpop.f32.mrb[15].mxu0  ;;  %v2043_v53 = vmul.f32 0.25, %v1959_v52  ;;  %v4808_v52 = vld [vmem:[#allocation2 + $0x3a0] ss:$0 sm:$0xff] }
 0xd95   :  { %v2051_v22 = vsel %vm648_vm3, %v2043_v53, -inf }
 0xd96   :  { %v2037_v35 = vpop.f32.mrb[28].mxu1 }
 0xd97   :  { %v3851_v36 = vpop.f32.mrb[29].mxu1  ;;  %v2044_v50 = vmul.f32 0.25, %v2037_v35 }
 0xd99   :  { %v2054_v54 = vsel %vm648_vm3, %v2044_v50, -inf }
 0xe1f   :  { %v2047_v37 = vpop.xlane.xlu1 %2046 }
 0xe20   :  { %v2057_v38 = vsub.f32 %v2041_v24, %v2047_v37  ;;  %v2050_v39 = vpop.xlane.xlu0 %2049 }
 0xe21   :  { %v2058_v40 = vsub.f32 %v2042_v30, %v2050_v39  ;;  %v2720_v39 = vld [vmem:[#allocation2 + $0x3b8] sm:$0xff] }
 0xe22   :  { %v2061_v41 = vmul.f32 1.442695, %v2057_v38  ;;  %v2719_v38 = vld [vmem:[#allocation2 + $0x3b0] sm:$0xff] }
 0xe23   :  { %v2063_v42 = vmul.f32 1.442695, %v2058_v40  ;;  %v2810_v40 = vld [vmem:[#allocation2 + $0x430] sm:$0xff] }
 0xe24   :  { %4506 = vpow2.f32 %v2061_v41  ;;  %v4299_v41 = vpack.c.bf16 %v2720_v39, %v2719_v38 }
 0xe25   :  { %4508 = vpow2.f32 %v2063_v42  ;;  %v2721_v42 = vld [vmem:[#allocation2 + $0x3c0] sm:$0xff] }
 0xe2e   :  { %v4507_v45 = vpop.eup %4506 }
 0xe2f   :  { %v4509_v47 = vpop.eup %4508  ;;  %v2069_v48 = vsel %vm648_vm3, %v4507_v45, 0.0 }
 0xe30   :  { %2070 = vadd.xlane.f32.xlu0 %v2069_v48  ;;  %v2072_v49 = vsel %vm648_vm3, %v4509_v47, 0.0 }
 0xe31   :  { %2073 = vadd.xlane.f32.xlu1 %v2072_v49  ;;  %v2812_v49 = vld [vmem:[#allocation2 + $0x440] sm:$0xff] }
 0xe42   :  { %2169 = vrot.lane.b32.xlu1 %v1723_v15, %s4571_s29 }
 0xe46   :  { %2093 = vrot.lane.b32.xlu0 %v1723_v15, %s4570_s28 }
 0xe65   :  { %2055 = vmax.xlane.f32.xlu0 %v2054_v54 }
 0xe66   :  { %2052 = vmax.xlane.f32.xlu1 %v2051_v22  ;;  %v2724_v22 = vld [vmem:[#allocation2 + $0x3d8] sm:$0xff] }
 0xebd   :  { %v2071_v55 = vpop.xlane.xlu0 %2070 }
 0xebe   :  { %4510 = vrcp.f32 %v2071_v55  ;;  %v2074_v51 = vpop.xlane.xlu1 %2073  ;;  %v2814_v55 = vld [vmem:[#allocation2 + $0x450] sm:$0xff] }
 0xebf   :  { %4512 = vrcp.f32 %v2074_v51  ;;  %v2815_v51 = vld [vmem:[#allocation2 + $0x458] sm:$0xff] }
 0xec1   :  { %v2094_v56 = vpop.permute.xlu0 %2093 }
 0xec2   :  { %v2170_v43 = vpop.permute.xlu1 %2169  ;;  %3853 = vmatpush3.msra.mxu0 %v2094_v56 }
 0xec3   :  { %3858 = vmatpush3.msra.mxu1 %v2170_v43  ;;  %4287 = vmatprep.subr.bf16.mxu0 %v4572_v16  ;;  %v4339_v43 = vpack.c.bf16 %v2815_v51, %v2814_v55  ;;  %v2923_v51 = vld [vmem:[#allocation2 + $0x4e0] sm:$0xff] }
 0xec4   :  { %4290 = vmatprep.subr.bf16.mxu1 %v4572_v16 }
 0xec8   :  { %v4511_v57 = vpop.eup %4510 }
 0xec9   :  { %v4513_v58 = vpop.eup %4512  ;;  %v2085_v59 = vmul.f32 %v4511_v57, %v4507_v45  ;;  %v2722_v45 = vld [vmem:[#allocation2 + $0x3c8] sm:$0xff]  ;;  %v2725_v57 = vld [vmem:[#allocation2 + $0x3e0] sm:$0xff] }
 0xeca   :  { %v2086_v60 = vmul.f32 %v4513_v58, %v4509_v47  ;;  %v4303_v48 = vpack.c.bf16 %v2722_v45, %v2721_v42  ;;  %v2726_v58 = vld [vmem:[#allocation2 + $0x3e8] sm:$0xff]  ;;  %v2917_v45 = vld [vmem:[#allocation2 + $0x4b0] sm:$0xff] }
 0xecb   :  { %3855 = vmatmul.mubr.msk.f32.vlgmr.msra.gmra.mrb[16].mxu0 %vm648_vm3, %v2085_v59  ;;  %v2816_v59 = vld [vmem:[#allocation2 + $0x460] sm:$0xff] }
 0xecc   :  { %3860 = vmatmul.mubr.msk.f32.vlgmr.msra.gmra.mrb[30].mxu1 %vm648_vm3, %v2086_v60  ;;  %3866 = vmatprep.mubr.msk.f32.mxu0 %vm4566_vm1, %v4565_v19  ;;  %v2817_v60 = vld [vmem:[#allocation2 + $0x468] sm:$0xff] }
 0xecd   :  { %3873 = vmatprep.mubr.msk.f32.mxu1 %vm4566_vm1, %v4565_v19  ;;  %4292 = vmatpush3.bf16.msra.mxu1 %v4291_v9 }
 0xece   :  { %4289 = vmatpush3.bf16.msra.mxu0 %v4288_v12  ;;  %3881 = vmatprep.subr.mxu1 %v4565_v19 }
 0xecf   :  { %3876 = vmatprep.subr.mxu0 %v4565_v19 }
 0xef2   :  { %v2056_v61 = vpop.xlane.xlu0 %2055 }
 0xef3   :  { %v2060_v62 = vsub.f32 %v2044_v50, %v2056_v61  ;;  %v2053_v63 = vpop.xlane.xlu1 %2052  ;;  %v2813_v50 = vld [vmem:[#allocation2 + $0x448] sm:$0xff]  ;;  %v4311_v61 = vpack.c.bf16 %v2726_v58, %v2725_v57  ;;  %v2925_v57 = vld [vmem:[#allocation2 + $0x4f0] sm:$0xff]  ;;  %v2926_v58 = vld [vmem:[#allocation2 + $0x4f8] sm:$0xff] }
 0xef4   :  { %v2059_v0 = vsub.f32 %v2043_v53, %v2053_v63  ;;  %v2723_v53 = vld [vmem:[#allocation2 + $0x3d0] sm:$0xff]  ;;  %v4335_v54 = vpack.c.bf16 %v2813_v50, %v2812_v49  ;;  %v2919_v49 = vld [vmem:[#allocation2 + $0x4c0] sm:$0xff]  ;;  %v2920_v50 = vld [vmem:[#allocation2 + $0x4c8] sm:$0xff] }
 0xef5   :  { %v2067_v1 = vmul.f32 1.442695, %v2060_v62  ;;  %v4307_v56 = vpack.c.bf16 %v2724_v22, %v2723_v53  ;;  %v4343_v62 = vpack.c.bf16 %v2817_v60, %v2816_v59  ;;  %v4367_v53 = vpack.c.bf16 %v2920_v50, %v2919_v49  ;;  %v2922_v22 = vld [vmem:[#allocation2 + $0x4d8] sm:$0xff]  ;;  %v2927_v60 = vld [vmem:[#allocation2 + $0x500] sm:$0xff]  ;;  %v3045_v49 = vld [vmem:[#allocation2 + $0x5a8] sm:$0xff] }
 0xef6   :  { %v2065_v2 = vmul.f32 1.442695, %v2059_v0  ;;  %v4379_v59 = vpack.c.bf16 %v2926_v58, %v2925_v57  ;;  %v3046_v50 = vld [vmem:[#allocation2 + $0x5b0] sm:$0xff]  ;;  %v3133_v57 = vld [vmem:[#allocation2 + $0x5e0] sm:$0xff]  ;;  %v3134_v58 = vld [vmem:[#allocation2 + $0x5e8] sm:$0xff] }
 0xef7   :  { %4514 = vpow2.f32 %v2067_v1 }
 0xef8   :  { %4516 = vpow2.f32 %v2065_v2 }
 0xf01   :  { %v4515_v3 = vpop.eup %4514 }
 0xf02   :  { %v4517_v4 = vpop.eup %4516  ;;  %v2078_v5 = vsel %vm648_vm3, %v4515_v3, 0.0 }
 0xf03   :  { %2079 = vadd.xlane.f32.xlu1 %v2078_v5  ;;  %v2075_v6 = vsel %vm648_vm3, %v4517_v4, 0.0 }
 0xf04   :  { %2076 = vadd.xlane.f32.xlu0 %v2075_v6 }
 0xf14   :  { %2467 = vrot.lane.b32.xlu1 %v4740_v17, %s4571_s29 }
 0xf1a   :  { %2391 = vrot.lane.b32.xlu0 %v4740_v17, %s4570_s28 }
 0xf90   :  { %v2080_v13 = vpop.xlane.xlu1 %2079 }
 0xf91   :  { %v2077_v14 = vpop.xlane.xlu0 %2076  ;;  %4518 = vrcp.f32 %v2080_v13 }
 0xf92   :  { %4520 = vrcp.f32 %v2077_v14  ;;  %v2727_v14 = vld [vmem:[#allocation2 + $0x3f0] sm:$0xff] }
 0xf94   :  { %v2468_v18 = vpop.permute.xlu1 %2467 }
 0xf95   :  { %v2392_v25 = vpop.permute.xlu0 %2391 }
 0xf9b   :  { %v4519_v15 = vpop.eup %4518 }
 0xf9c   :  { %v4521_v21 = vpop.eup %4520  ;;  %v2088_v27 = vmul.f32 %v4519_v15, %v4515_v3  ;;  %v3277_v3 = vld [vmem:[#allocation2 + $0x3a8] ss:$0 sm:$0xff]  ;;  %v2728_v15 = vld [vmem:[#allocation2 + $0x3f8] sm:$0xff] }
 0xf9d   :  { %v2087_v24 = vmul.f32 %v4521_v21, %v4517_v4  ;;  %v2819_v21 = vld [vmem:[#allocation2 + $0x478] sm:$0xff] }
 0xf9e   :  { %v2165_v20 = vpop.f32.mrb[16].mxu0 }
 0xf9f   :  { %v3856_v23 = vpop.f32.mrb[17].mxu0  ;;  %v2241_v17 = vpop.f32.mrb[30].mxu1  ;;  %3874 = vmatmul.mubr.msk.f32.vlgmr.msra.gmra.mrb[32].mxu1 %vm336_vm2, %v2165_v20  ;;  %v4315_v20 = vpack.c.bf16 %v2728_v15, %v2727_v14 }
 0xfa0   :  { %3882 = vmatpush3.msra.mxu1 %v2468_v18  ;;  %v3861_v26 = vpop.f32.mrb[31].mxu1  ;;  %3867 = vmatmul.mubr.msk.f32.vlgmr.msra.gmra.mrb[18].mxu0 %vm336_vm2, %v2241_v17  ;;  %v2818_v18 = vld [vmem:[#allocation2 + $0x470] sm:$0xff]  ;;  %v2729_v17 = vld [vmem:[#allocation2 + $0x400] sm:$0xff] }
 0xfa1   :  { %3877 = vmatpush3.msra.mxu0 %v2392_v25  ;;  %3883 = vmatprep.mubr.msk.f32.mxu1 %vm4566_vm1, %v4565_v19  ;;  %v4347_v23 = vpack.c.bf16 %v2819_v21, %v2818_v18  ;;  %v2730_v25 = vld [vmem:[#allocation2 + $0x408] sm:$0xff]  ;;  %v2820_v26 = vld [vmem:[#allocation2 + $0x480] sm:$0xff] }
 0xfa2   :  { %3878 = vmatprep.mubr.msk.f32.mxu0 %vm4566_vm1, %v4565_v19  ;;  %4293 = vmatprep.subr.bf16.mxu0 %v4572_v16 }
 0xfa3   :  { %3884 = vmatmul.mubr.msk.f32.vlgmr.msra.gmra.mrb[34].mxu1 %vm648_vm3, %v2088_v27  ;;  %4296 = vmatprep.subr.bf16.mxu1 %v4572_v16  ;;  %v2821_v27 = vld [vmem:[#allocation2 + $0x488] sm:$0xff] }
 0xfa4   :  { %3879 = vmatmul.mubr.msk.f32.vlgmr.msra.gmra.mrb[20].mxu0 %vm648_vm3, %v2087_v24  ;;  %4298 = vmatpush3.bf16.msra.mxu1 %v4291_v9  ;;  %v2731_v24 = vld [vmem:[#allocation2 + $0x410] sm:$0xff] }
 0xfa5   :  { %4295 = vmatpush3.bf16.msra.mxu0 %v4288_v12  ;;  %3890 = vmatprep.mubr.msk.f32.mxu0 %vm4566_vm1, %v4565_v19 }
 0xfa6   :  { %3897 = vmatprep.mubr.msk.f32.mxu1 %vm4566_vm1, %v4565_v19  ;;  %4300 = vmatprep.subr.bf16.mxu0 %v4299_v41 }
0x1072   :  { %v2387_v28 = vpop.f32.mrb[32].mxu1 }
0x1073   :  { %v2314_v29 = vpop.f32.mrb[18].mxu0  ;;  %v3875_v30 = vpop.f32.mrb[33].mxu1 }
0x1074   :  { %v2388_v31 = vadd.f32 %v2387_v28, %v2314_v29  ;;  %v3868_v32 = vpop.f32.mrb[19].mxu0  ;;  %v2732_v28 = vld [vmem:[#allocation2 + $0x418] sm:$0xff]  ;;  %v4351_v29 = vpack.c.bf16 %v2821_v27, %v2820_v26  ;;  %v3033_v27 = vld [vmem:[#allocation2 + $0x548] sm:$0xff] }
0x1075   :  { %v4323_v30 = vpack.c.bf16 %v2732_v28, %v2731_v24  ;;  %v2823_v32 = vld [vmem:[#allocation2 + $0x498] sm:$0xff]  ;;  %v3034_v28 = vld [vmem:[#allocation2 + $0x550] sm:$0xff] }
0x1076   :  { %v2689_v33 = vadd.f32 %v2388_v31, %v4727_v46  ;;  %v2539_v16 = vpop.f32.mrb[34].mxu1  ;;  %v2811_v46 = vld [vmem:[#allocation2 + $0x438] sm:$0xff]  ;;  %v2822_v31 = vld [vmem:[#allocation2 + $0x490] sm:$0xff] }
0x1077   :  { %v2463_v34 = vpop.f32.mrb[20].mxu0  ;;  %v3885_v35 = vpop.f32.mrb[35].mxu1  ;;  %3891 = vmatmul.mubr.msk.f32.vlgmr.msra.gmra.mrb[22].mxu0 %vm336_vm2, %v2539_v16  ;;  %v4331_v47 = vpack.c.bf16 %v2811_v46, %v2810_v40  ;;  %v2734_v16 = vld [vmem:[#allocation2 + $0x428] sm:$0xff]  ;;  %v3031_v26 = vld [vmem:[#allocation2 + $0x538] sm:$0xff] }
0x1078   :  { %v4813_v36 = vadd.f32 %v4808_v52, %v2689_v33  ;;  %v3880_v37 = vpop.f32.mrb[21].mxu0  ;;  %3898 = vmatmul.mubr.msk.f32.vlgmr.msra.gmra.mrb[36].mxu1 %vm336_vm2, %v2463_v34  ;;  %4302 = vmatpush3.bf16.msra.mxu0 %v4299_v41  ;;  %v2733_v33 = vld [vmem:[#allocation2 + $0x420] sm:$0xff]  ;;  %v2825_v35 = vld [vmem:[#allocation2 + $0x4a8] sm:$0xff] }
0x1079   :  { %4332 = vmatprep.subr.bf16.mxu1 %v4331_v47  ;;  %4304 = vmatprep.subr.bf16.mxu0 %v4303_v48  ;;  %v2824_v34 = vld [vmem:[#allocation2 + $0x4a0] sm:$0xff]  ;;  %v4327_v37 = vpack.c.bf16 %v2734_v16, %v2733_v33 }
0x107a   :  { %v2699_v19 = vmul.f32 %v4813_v36, %v4813_v36  ;;  %4334 = vmatpush3.bf16.msra.mxu1 %v4331_v47  ;;  %v2918_v47 = vld [vmem:[#allocation2 + $0x4b8] sm:$0xff] }
0x107b   :  { %4336 = vmatprep.subr.bf16.mxu1 %v4335_v54 }
0x107c   :  { %2701 = vadd.xlane.f32.xlu1 %v2699_v19  ;;  %4306 = vmatpush3.bf16.msra.mxu0 %v4303_v48  ;;  %v4359_v19 = vpack.c.bf16 %v2825_v35, %v2824_v34  ;;  %v4363_v48 = vpack.c.bf16 %v2918_v47, %v2917_v45  ;;  %v3044_v47 = vld [vmem:[#allocation2 + $0x5a0] sm:$0xff] }
0x107d   :  { %4308 = vmatprep.subr.bf16.mxu0 %v4307_v56 }
0x107e   :  { %4338 = vmatpush3.bf16.msra.mxu1 %v4335_v54  ;;  %v2921_v54 = vld [vmem:[#allocation2 + $0x4d0] sm:$0xff] }
0x107f   :  { %4340 = vmatprep.subr.bf16.mxu1 %v4339_v43  ;;  %v4371_v55 = vpack.c.bf16 %v2922_v22, %v2921_v54  ;;  %v3129_v54 = vld [vmem:[#allocation2 + $0x5c0] sm:$0xff]  ;;  %v3130_v22 = vld [vmem:[#allocation2 + $0x5c8] sm:$0xff] }
0x1080   :  { %4310 = vmatpush3.bf16.msra.mxu0 %v4307_v56  ;;  %v2924_v56 = vld [vmem:[#allocation2 + $0x4e8] sm:$0xff] }
0x1081   :  { %4312 = vmatprep.subr.bf16.mxu0 %v4311_v61 }
0x1082   :  { %4342 = vmatpush3.bf16.msra.mxu1 %v4339_v43  ;;  %v4375_v43 = vpack.c.bf16 %v2924_v56, %v2923_v51  ;;  %v4427_v51 = vpack.c.bf16 %v3130_v22, %v3129_v54  ;;  %v3132_v56 = vld [vmem:[#allocation2 + $0x5d8] sm:$0xff] }
0x1083   :  { %4344 = vmatprep.subr.bf16.mxu1 %v4343_v62 }
0x1084   :  { %4314 = vmatpush3.bf16.msra.mxu0 %v4311_v61  ;;  %v2928_v61 = vld [vmem:[#allocation2 + $0x508] sm:$0xff] }
0x1085   :  { %4316 = vmatprep.subr.bf16.mxu0 %v4315_v20 }
0x1086   :  { %4346 = vmatpush3.bf16.msra.mxu1 %v4343_v62  ;;  %v4383_v62 = vpack.c.bf16 %v2928_v61, %v2927_v60  ;;  %v3135_v60 = vld [vmem:[#allocation2 + $0x5f0] sm:$0xff]  ;;  %v3136_v61 = vld [vmem:[#allocation2 + $0x5f8] sm:$0xff] }
0x1087   :  { %4348 = vmatprep.subr.bf16.mxu1 %v4347_v23 }
0x1088   :  { %4318 = vmatpush3.bf16.msra.mxu0 %v4315_v20 }
0x108a   :  { %4350 = vmatpush3.bf16.msra.mxu1 %v4347_v23 }
0x108b   :  { %4352 = vmatprep.subr.bf16.mxu1 %v4351_v29 }
0x108e   :  { %4354 = vmatpush3.bf16.msra.mxu1 %v4351_v29  ;;  %v4399_v29 = vpack.c.bf16 %v3034_v28, %v3033_v27 }
0x1109   :  { %v2702_v63 = vpop.xlane.xlu1 %2701 }
0x110a   :  { %v2705_v0 = vmul.f32 0.03125, %v2702_v63  ;;  %v2929_v63 = vld [vmem:[#allocation2 + $0x510] sm:$0xff] }
0x110c   :  { %v2707_v1 = vadd.f32 1e-06, %v2705_v0  ;;  %v2930_v0 = vld [vmem:[#allocation2 + $0x518] sm:$0xff] }
0x110e   :  { %4522 = vrsqrt.f32 %v2707_v1  ;;  %v4387_v1 = vpack.c.bf16 %v2930_v0, %v2929_v63  ;;  %v3137_v63 = vld [vmem:[#allocation2 + $0x600] sm:$0xff]  ;;  %v3138_v0 = vld [vmem:[#allocation2 + $0x608] sm:$0xff] }
0x1118   :  { %v4523_v2 = vpop.eup %4522 }
0x1119   :  { %v2711_v4 = vmul.f32 %v4523_v2, %v4813_v36  ;;  %v2931_v2 = vld [vmem:[#allocation2 + $0x520] sm:$0xff] }
0x111b   :  { %v2717_v5 = vmul.f32 %v3277_v3, %v2711_v4 }
0x111d   :  { %3932 = vmatprep.mubr.f32.mxu0 %v2717_v5  ;;  %3967 = vmatprep.mubr.f32.mxu1 %v2717_v5 }
0x114a   :  { %v2612_v6 = vpop.f32.mrb[22].mxu0 }
0x114b   :  { %v3892_v7 = vpop.f32.mrb[23].mxu0  ;;  %v2685_v8 = vpop.f32.mrb[36].mxu1 }
0x114c   :  { %v2686_v9 = vadd.f32 %v2685_v8, %v2612_v6  ;;  %v3899_v10 = vpop.f32.mrb[37].mxu1 }
0x114e   :  { %v2690_v11 = vadd.f32 %v2686_v9, %v4724_v44  ;;  %v4319_v44 = vpack.c.bf16 %v2730_v25, %v2729_v17 }
0x1150   :  { %v4821_v12 = vadd.f32 %v4808_v52, %v2690_v11  ;;  %4320 = vmatprep.subr.bf16.mxu0 %v4319_v44  ;;  %v4355_v52 = vpack.c.bf16 %v2823_v32, %v2822_v31  ;;  %v3036_v31 = vld [vmem:[#allocation2 + $0x560] sm:$0xff] }
0x1151   :  { %4322 = vmatpush3.bf16.msra.mxu0 %v4319_v44  ;;  %v3032_v44 = vld [vmem:[#allocation2 + $0x540] sm:$0xff] }
0x1152   :  { %v2700_v13 = vmul.f32 %v4821_v12, %v4821_v12  ;;  %4324 = vmatprep.subr.bf16.mxu0 %v4323_v30  ;;  %4356 = vmatprep.subr.bf16.mxu1 %v4355_v52  ;;  %v4395_v24 = vpack.c.bf16 %v3032_v44, %v3031_v26  ;;  %v3143_v26 = vld [vmem:[#allocation2 + $0x630] sm:$0xff]  ;;  %v3144_v44 = vld [vmem:[#allocation2 + $0x638] sm:$0xff] }
0x1153   :  { %4358 = vmatpush3.bf16.msra.mxu1 %v4355_v52  ;;  %v4455_v27 = vpack.c.bf16 %v3144_v44, %v3143_v26 }
0x1154   :  { %2703 = vadd.xlane.f32.xlu0 %v2700_v13  ;;  %4360 = vmatprep.subr.bf16.mxu1 %v4359_v19 }
0x1155   :  { %4326 = vmatpush3.bf16.msra.mxu0 %v4323_v30  ;;  %v3035_v30 = vld [vmem:[#allocation2 + $0x558] sm:$0xff] }
0x1156   :  { %4328 = vmatprep.subr.bf16.mxu0 %v4327_v37  ;;  %v4403_v32 = vpack.c.bf16 %v3036_v31, %v3035_v30 }
0x1157   :  { %4362 = vmatpush3.bf16.msra.mxu1 %v4359_v19  ;;  %v3037_v19 = vld [vmem:[#allocation2 + $0x568] sm:$0xff] }
0x1158   :  { %4396 = vmatprep.subr.bf16.mxu1 %v4395_v24 }
0x1159   :  { %4330 = vmatpush3.bf16.msra.mxu0 %v4327_v37 }
0x115a   :  { %4364 = vmatprep.subr.bf16.mxu0 %v4363_v48 }
0x11e1   :  { %v2704_v38 = vpop.xlane.xlu0 %2703 }
0x11e2   :  { %v2706_v39 = vmul.f32 0.03125, %v2704_v38  ;;  %v3038_v38 = vld [vmem:[#allocation2 + $0x570] sm:$0xff] }
0x11e4   :  { %v2708_v40 = vadd.f32 1e-06, %v2706_v39  ;;  %v4407_v39 = vpack.c.bf16 %v3038_v38, %v3037_v19 }
0x11e6   :  { %4524 = vrsqrt.f32 %v2708_v40  ;;  %v3039_v40 = vld [vmem:[#allocation2 + $0x578] sm:$0xff] }
0x11f0   :  { %v4525_v41 = vpop.eup %4524 }
0x11f1   :  { %v2712_v46 = vmul.f32 %v4525_v41, %v4821_v12 }
0x11f3   :  { %v2718_v42 = vmul.f32 %v3277_v3, %v2712_v46  ;;  %v2932_v3 = vld [vmem:[#allocation2 + $0x528] sm:$0xff] }
0x11f4   :  { %v4391_v4 = vpack.c.bf16 %v2932_v3, %v2931_v2  ;;  %v3041_v46 = vld [vmem:[#allocation2 + $0x588] sm:$0xff]  ;;  %v3139_v2 = vld [vmem:[#allocation2 + $0x610] sm:$0xff]  ;;  %v3140_v3 = vld [vmem:[#allocation2 + $0x618] sm:$0xff] }
0x11f5   :  { %3933 = vmatmul.mubr.f32.vlgmr.msra.gmra.mrb[24].mxu0 %v2718_v42  ;;  %3968 = vmatmul.mubr.f32.vlgmr.msra.gmra.mrb[38].mxu1 %v2718_v42  ;;  %v3042_v42 = vld [vmem:[#allocation2 + $0x590] sm:$0xff] }
0x11f6   :  { %4366 = vmatpush3.bf16.msra.mxu0 %v4363_v48  ;;  %4398 = vmatpush3.bf16.msra.mxu1 %v4395_v24  ;;  %v4415_v45 = vpack.c.bf16 %v3042_v42, %v3041_v46  ;;  %v3281_v24 = vld [vmem:[#allocation2 + $0x5b8] ss:$0 sm:$0xff] }
0x11f7   :  { %4368 = vmatprep.subr.bf16.mxu0 %v4367_v53  ;;  %4400 = vmatprep.subr.bf16.mxu1 %v4399_v29 }
0x11fa   :  { %4370 = vmatpush3.bf16.msra.mxu0 %v4367_v53  ;;  %4402 = vmatpush3.bf16.msra.mxu1 %v4399_v29  ;;  %v4423_v53 = vpack.c.bf16 %v3046_v50, %v3045_v49 }
0x11fb   :  { %4372 = vmatprep.subr.bf16.mxu0 %v4371_v55  ;;  %4404 = vmatprep.subr.bf16.mxu1 %v4403_v32 }
0x11fe   :  { %4374 = vmatpush3.bf16.msra.mxu0 %v4371_v55  ;;  %4406 = vmatpush3.bf16.msra.mxu1 %v4403_v32  ;;  %v3131_v55 = vld [vmem:[#allocation2 + $0x5d0] sm:$0xff] }
0x11ff   :  { %4376 = vmatprep.subr.bf16.mxu0 %v4375_v43  ;;  %4408 = vmatprep.subr.bf16.mxu1 %v4407_v39 }
0x1202   :  { %4378 = vmatpush3.bf16.msra.mxu0 %v4375_v43  ;;  %4410 = vmatpush3.bf16.msra.mxu1 %v4407_v39  ;;  %v4431_v43 = vpack.c.bf16 %v3132_v56, %v3131_v55 }
0x1203   :  { %4380 = vmatprep.subr.bf16.mxu0 %v4379_v59 }
0x1206   :  { %4382 = vmatpush3.bf16.msra.mxu0 %v4379_v59  ;;  %v4435_v59 = vpack.c.bf16 %v3134_v58, %v3133_v57 }
0x1207   :  { %4384 = vmatprep.subr.bf16.mxu0 %v4383_v62 }
0x120a   :  { %4386 = vmatpush3.bf16.msra.mxu0 %v4383_v62  ;;  %v4439_v62 = vpack.c.bf16 %v3136_v61, %v3135_v60 }
0x120b   :  { %4388 = vmatprep.subr.bf16.mxu0 %v4387_v1 }
0x120e   :  { %4390 = vmatpush3.bf16.msra.mxu0 %v4387_v1  ;;  %v4443_v1 = vpack.c.bf16 %v3138_v0, %v3137_v63 }
0x120f   :  { %4392 = vmatprep.subr.bf16.mxu0 %v4391_v4 }
0x1212   :  { %4394 = vmatpush3.bf16.msra.mxu0 %v4391_v4  ;;  %v4447_v4 = vpack.c.bf16 %v3140_v3, %v3139_v2 }
0x1213   :  { %4428 = vmatprep.subr.bf16.mxu0 %v4427_v51 }
0x12c8   :  { %v3934_v5 = vpop.f32.mrb[24].mxu0  ;;  %v3969_v6 = vpop.f32.mrb[38].mxu1 }
0x12c9   :  { %v3279_v7 = vmul.f32 -1.442695, %v3934_v5  ;;  %v2801_v8 = vpop.f32.mrb[25].mxu0  ;;  %v2892_v9 = vpop.f32.mrb[39].mxu1 }
0x12ca   :  { %v3278_v10 = vmul.f32 -1.442695, %v2801_v8 }
0x12cb   :  { %4526 = vpow2.f32 %v3279_v7 }
0x12cc   :  { %4528 = vpow2.f32 %v3278_v10 }
0x12d5   :  { %v4527_v11 = vpop.eup %4526 }
0x12d6   :  { %v4529_v13 = vpop.eup %4528  ;;  %v2908_v14 = vadd.f32 1.0, %v4527_v11 }
0x12d7   :  { %v2907_v15 = vadd.f32 1.0, %v4529_v13 }
0x12d8   :  { %4530 = vrcp.f32 %v2908_v14 }
0x12d9   :  { %4532 = vrcp.f32 %v2907_v15 }
0x12e2   :  { %v4531_v18 = vpop.eup %4530 }
0x12e3   :  { %v4533_v20 = vpop.eup %4532  ;;  %v2914_v21 = vmul.f32 %v4531_v18, %v3934_v5  ;;  %v3141_v5 = vld [vmem:[#allocation2 + $0x620] sm:$0xff] }
0x12e4   :  { %v2913_v23 = vmul.f32 %v4533_v20, %v2801_v8  ;;  %v3280_v20 = vld [vmem:[#allocation2 + $0x530] ss:$0 sm:$0xff] }
0x12e5   :  { %v2916_v17 = vmul.f32 %v3969_v6, %v2914_v21  ;;  %v3142_v6 = vld [vmem:[#allocation2 + $0x628] sm:$0xff] }
0x12e6   :  { %v2915_v25 = vmul.f32 %v2913_v23, %v2892_v9  ;;  %v4451_v7 = vpack.c.bf16 %v3142_v6, %v3141_v5 }
0x12e8   :  { %4002 = vmatprep.mubr.f32.mxu0 %v2915_v25 }
0x12e9   :  { %4003 = vmatmul.mubr.f32.vlgmr.msra.gmra.mrb[26].mxu0 %v2916_v17 }
0x12ea   :  { %4430 = vmatpush3.bf16.msra.mxu0 %v4427_v51 }
0x12eb   :  { %4432 = vmatprep.subr.bf16.mxu0 %v4431_v43 }
0x12ee   :  { %4434 = vmatpush3.bf16.msra.mxu0 %v4431_v43 }
0x12ef   :  { %4436 = vmatprep.subr.bf16.mxu0 %v4435_v59 }
0x12f2   :  { %4438 = vmatpush3.bf16.msra.mxu0 %v4435_v59 }
0x12f3   :  { %4440 = vmatprep.subr.bf16.mxu0 %v4439_v62 }
0x12f6   :  { %4442 = vmatpush3.bf16.msra.mxu0 %v4439_v62 }
0x12f7   :  { %4444 = vmatprep.subr.bf16.mxu0 %v4443_v1 }
0x12fa   :  { %4446 = vmatpush3.bf16.msra.mxu0 %v4443_v1 }
0x12fb   :  { %4448 = vmatprep.subr.bf16.mxu0 %v4447_v4 }
0x12fe   :  { %4450 = vmatpush3.bf16.msra.mxu0 %v4447_v4 }
0x12ff   :  { %4452 = vmatprep.subr.bf16.mxu0 %v4451_v7 }
0x1302   :  { %4454 = vmatpush3.bf16.msra.mxu0 %v4451_v7 }
0x1303   :  { %4456 = vmatprep.subr.bf16.mxu0 %v4455_v27 }
0x1306   :  { %4458 = vmatpush3.bf16.msra.mxu0 %v4455_v27 }
0x13bc   :  { %v4004_v52 = vpop.f32.mrb[26].mxu0 }
0x13bd   :  { %v4827_v33 = vadd.f32 %v4004_v52, %v4821_v12  ;;  %v2999_v16 = vpop.f32.mrb[27].mxu0  ;;  %v3040_v12 = vld [vmem:[#allocation2 + $0x580] sm:$0xff] }
0x13be   :  { %v4830_v34 = vadd.f32 %v2999_v16, %v4813_v36  ;;  %v4411_v41 = vpack.c.bf16 %v3040_v12, %v3039_v40  ;;  %v3043_v36 = vld [vmem:[#allocation2 + $0x598] sm:$0xff] }
0x13bf   :  { %v3012_v35 = vmul.f32 %v4827_v33, %v4827_v33  ;;  %v4419_v48 = vpack.c.bf16 %v3044_v47, %v3043_v36 }
0x13c0   :  { %v3011_v37 = vmul.f32 %v4830_v34, %v4830_v34  ;;  %4412 = vmatprep.subr.bf16.mxu1 %v4411_v41 }
0x13c1   :  { %3015 = vadd.xlane.f32.xlu1 %v3012_v35  ;;  %4414 = vmatpush3.bf16.msra.mxu1 %v4411_v41 }
0x13c2   :  { %3013 = vadd.xlane.f32.xlu0 %v3011_v37  ;;  %4416 = vmatprep.subr.bf16.mxu1 %v4415_v45 }
0x13c5   :  { %4418 = vmatpush3.bf16.msra.mxu1 %v4415_v45 }
0x13c6   :  { %4420 = vmatprep.subr.bf16.mxu1 %v4419_v48 }
0x13c9   :  { %4422 = vmatpush3.bf16.msra.mxu1 %v4419_v48 }
0x13ca   :  { %4424 = vmatprep.subr.bf16.mxu1 %v4423_v53 }
0x13cd   :  { %4426 = vmatpush3.bf16.msra.mxu1 %v4423_v53 }
0x144e   :  { %v3016_v8 = vpop.xlane.xlu1 %3015 }
0x144f   :  { %v3018_v9 = vmul.f32 0.03125, %v3016_v8  ;;  %v3014_v10 = vpop.xlane.xlu0 %3013 }
0x1450   :  { %v3017_v11 = vmul.f32 0.03125, %v3014_v10 }
0x1451   :  { %v3020_v13 = vadd.f32 1e-06, %v3018_v9 }
0x1452   :  { %v3019_v14 = vadd.f32 1e-06, %v3017_v11 }
0x1453   :  { %4534 = vrsqrt.f32 %v3020_v13 }
0x1454   :  { %4536 = vrsqrt.f32 %v3019_v14 }
0x145d   :  { %v4535_v15 = vpop.eup %4534 }
0x145e   :  { %v4537_v18 = vpop.eup %4536  ;;  %v3024_v21 = vmul.f32 %v4535_v15, %v4827_v33  ;;  %v3282_v33 = vld [vmem:[#allocation2 + $0x640] ss:$0 sm:$0xff] }
0x145f   :  { %v3023_v23 = vmul.f32 %v4537_v18, %v4830_v34 }
0x1460   :  { %v3030_v25 = vmul.f32 %v3280_v20, %v3024_v21 }
0x1461   :  { %v3029_v17 = vmul.f32 %v3280_v20, %v3023_v23 }
0x1463   :  { %4037 = vmatprep.mubr.f32.mxu1 %v3029_v17 }
0x1464   :  { %4038 = vmatmul.mubr.f32.vlgmr.msra.gmra.mrb[40].mxu1 %v3030_v25 }
0x1537   :  { %v4039_v28 = vpop.f32.mrb[40].mxu1 }
0x1538   :  { %v3124_v29 = vadd.f32 %v4039_v28, %v3281_v24  ;;  %v3118_v30 = vpop.f32.mrb[41].mxu1 }
0x1539   :  { %v3119_v31 = vadd.f32 %v3281_v24, %v3118_v30 }
0x153a   :  { %v3128_v52 = vmax.f32 %v3124_v29, 0.0 }
0x153b   :  { %v3127_v32 = vmax.f32 %v3119_v31, 0.0 }
0x153d   :  { %4072 = vmatprep.mubr.f32.mxu0 %v3127_v32 }
0x153e   :  { %4073 = vmatmul.mubr.f32.vlgmr.msra.gmra.mrb[28].mxu0 %v3128_v52 }
0x1611   :  { %v4074_v16 = vpop.f32.mrb[28].mxu0 }
0x1612   :  { %v3222_v34 = vadd.f32 %v4074_v16, %v3282_v33  ;;  %v3216_v35 = vpop.f32.mrb[29].mxu0 }
0x1613   :  { %v3217_v37 = vadd.f32 %v3282_v33, %v3216_v35 }
0x1614   :  { %3226 = vst [vmem:[%s4846_s2 + $0x8] sm:$0xff] %v3222_v34 }
0x1615   :  { %3225 = vst [vmem:[%s4846_s2] sm:$0xff] %v3217_v37 }
0x1616   :  { %3231 = vsyncpa [#allocation3], 1 }

</bundles_post_ra>
